<compile_context>
chip_gen: v5e
topology: v5e:2x2
jax: 0.10.0
libtpu: 0.0.40
codegen_flags: <defaults>
</compile_context>

<pallas_src>
import functools

import jax
import jax.numpy as jnp
from jax.experimental import pallas as pl
from jax.experimental.pallas import tpu as pltpu


def _round_up(x, m):
    return -(-x // m) * m


def _pad_out_features(n_out):
    """Pad out_features so it divides 128 (n_out <= 128) or is a multiple of
    128 (n_out > 128): every per-timestep lane offset stays 128-tileable."""
    if n_out >= 128:
        return _round_up(n_out, 128)
    p = 1
    while p < n_out:
        p *= 2
    return p


def _sublane_multiple(dtype):
    """Minimum second-minor block multiple for a dtype (8 f32 / 16 bf16)."""
    return 8 * max(1, 4 // jnp.dtype(dtype).itemsize)


def _align_tc(tc, B, n_sub, x_dtype):
    """Keep the 2-D x block (tc*B, n_in) sublane-tile aligned for its dtype."""
    align = _sublane_multiple(x_dtype)
    while (tc * B) % align != 0:
        tc += n_sub
    return tc


def _choose_tc(T, B, n_out_p, n_sub, x_dtype):
    """Timesteps per grid step: ~2048 packed output lanes and >=128 MXU rows,
    bounded by the (slab-rounded) sequence length and by unrolled code size."""
    tc = max(2048 // n_out_p, -(-128 // B), n_sub)
    tc = _round_up(tc, n_sub)
    tc = min(tc, 32 * n_sub)                   # bound the unrolled kernel body
    tc = min(tc, _round_up(T, n_sub))          # never exceed the sequence
    return _align_tc(tc, B, n_sub, x_dtype)


def _li_kernel(tc, n_sub, x_ref, wt_ref, aux_ref, u0_ref, out_ref, u_scr):
    """One grid step = `tc` timesteps of the LI recurrence.

    x_ref:   (tc*B, n_in)      time-chunk of inputs, rows = (t, b) flattened
    wt_ref:  (n_in, n_out_p)   pre-transposed, zero-padded weight   (resident)
    aux_ref: (3, n_out_p)      rows = [bias, decay, 1 - decay]      (resident)
    u0_ref:  (B, n_out_p)      initial state                        (resident)
    out_ref: (B, tc*n_out_p)   packed output: lanes [t*n_out_p:(t+1)*n_out_p]
                               hold u_t for the t-th timestep of this chunk
    u_scr:   (B, n_out_p) f32  recurrent state carried across grid steps
    """
    B, n_out_p = u_scr.shape
    slab_w = n_sub * n_out_p            # multiple of 128 by construction
    n_slabs = tc // n_sub

    @pl.when(pl.program_id(0) == 0)
    def _():
        u_scr[...] = u0_ref[...].astype(jnp.float32)

    # One MXU matmul for all tc timesteps of this chunk, f32 accumulation.
    cur_all = jnp.dot(
        x_ref[...], wt_ref[...].astype(x_ref.dtype),
        preferred_element_type=jnp.float32,
        precision=jax.lax.Precision.HIGHEST)            # (tc*B, n_out_p)

    # Hoisted broadcasts (JAX does not CSE broadcast_in_dim) + folded bias.
    bias = jnp.broadcast_to(aux_ref[0:1, :], (B, n_out_p))
    decay = jnp.broadcast_to(aux_ref[1:2, :], (B, n_out_p))
    omd = jnp.broadcast_to(aux_ref[2:3, :], (B, n_out_p))
    ob = omd * bias                      # u = decay*u + omd*cur + omd*bias

    # Serial blend. Only `decay*u + (...)` is on the dependency chain; the
    # (omd*cur + ob) terms are independent and scheduled in parallel. Every
    # n_sub sub-steps are packed into one (B, >=128)-lane slab and flushed
    # with a single full-width, 128-aligned store -> a handful of live vregs.
    u = u_scr[...]
    for s in range(n_slabs):
        chunks = []
        for j in range(n_sub):
            t = s * n_sub + j
            cur = cur_all[t * B:(t + 1) * B, :]
            u = decay * u + (omd * cur + ob)
            chunks.append(u)
        slab = chunks[0] if n_sub == 1 else jnp.concatenate(chunks, axis=-1)
        off = s * slab_w
        out_ref[:, off:off + slab_w] = slab.astype(out_ref.dtype)
    u_scr[...] = u


def prepare_li_params(weight, bias, decay):
    """One-time parameter preparation (NOT per call).

    weight: (n_out, n_in) PyTorch convention; bias/decay: (n_out,).
    Returns (wt, aux, n_out): wt = zero-padded W^T (n_in, n_out_p),
    aux rows = [bias, decay, 1-decay] (zero-padded so padded output columns
    stay exactly 0).
    """
    weight = jnp.asarray(weight, jnp.float32)
    bias = jnp.asarray(bias, jnp.float32)
    decay = jnp.asarray(decay, jnp.float32)
    n_out, n_in = weight.shape
    pad = _pad_out_features(n_out) - n_out
    wt = jnp.pad(weight.T, ((0, 0), (0, pad)))
    aux = jnp.pad(jnp.stack([bias, decay, 1.0 - decay], axis=0),
                  ((0, 0), (0, pad)))
    return wt, aux, n_out


def li_sequence(xs, params, u0, *, block_timesteps=None):
    """Run the LI readout over a full sequence in ONE pallas_call.

    xs: (T, B, n_in)  f32 or bf16 (bf16 halves the dominant HBM traffic; the
                      matmul still accumulates in f32). B ideally a multiple
                      of 8 (sublane alignment).
    u0: (B, n_out)
    Returns (us, u_T): us is BATCH-MAJOR (B, T, n_out), u_T is (B, n_out).
    Batch-major output keeps kernel stores lane-dense and avoids an extra
    full-output HBM transpose; transpose in the consumer if time-major is
    needed.
    """
    wt, aux, n_out = params
    T, B, n_in = xs.shape
    n_in_w, n_out_p = wt.shape
    assert n_in == n_in_w

    n_sub = max(1, 128 // n_out_p)      # timesteps packed per 128-lane slab
    if block_timesteps is None:
        tc = _choose_tc(T, B, n_out_p, n_sub, xs.dtype)
    else:
        tc = _align_tc(_round_up(block_timesteps, n_sub), B, n_sub, xs.dtype)
    G = pl.cdiv(T, tc)

    # Free reshape / tiny pads only: no full-xs copy, no host-side time-axis
    # zero padding (the ragged tail is a masked boundary block; its outputs
    # land past lane T*n_out_p and are discarded by the HBM write mask).
    x2 = xs.reshape(T * B, n_in)
    u0p = jnp.pad(u0.astype(jnp.float32), ((0, 0), (0, n_out_p - n_out)))

    kernel = functools.partial(_li_kernel, tc, n_sub)
    packed = pl.pallas_call(
        kernel,
        out_shape=jax.ShapeDtypeStruct((B, T * n_out_p), jnp.float32),
        grid=(G,),
        in_specs=[
            pl.BlockSpec((tc * B, n_in), lambda g: (g, 0)),     # x: streamed
            pl.BlockSpec((n_in, n_out_p), lambda g: (0, 0)),    # W^T: resident
            pl.BlockSpec((3, n_out_p), lambda g: (0, 0)),       # aux: resident
            pl.BlockSpec((B, n_out_p), lambda g: (0, 0)),       # u0: resident
        ],
        out_specs=pl.BlockSpec((B, tc * n_out_p), lambda g: (0, g)),
        scratch_shapes=[pltpu.VMEM((B, n_out_p), jnp.float32)],
        compiler_params=pltpu.CompilerParams(
            dimension_semantics=("arbitrary",)),      # sequential time scan
    )(x2, wt, aux, u0p)

    us = packed.reshape(B, T, n_out_p)[..., :n_out]   # free reshape + pad slice
    return us, us[:, -1, :]


def li_forward(x, params, u_tm1):
    """Single LI step with the module's forward semantics: returns (u_t, u_t).

    NOTE: do NOT call this per-timestep inside a Python/scan loop over T --
    each call pays a full pallas_call launch. Route sequences via li_sequence.
    """
    us, _ = li_sequence(x[None], params, u_tm1)
    u_t = us[:, 0, :]
    return u_t, u_t


def init_li_params(key, n_in, n_out, tau_min=15.0, tau_max=25.0, dt=1.0):
    """Matches the module's reset_parameters:
    weight ~ U(-sqrt(1/n_in), sqrt(1/n_in)), bias = 0,
    tau ~ U(tau_min, tau_max) held fixed ('fixed' TauTrainer), decay=exp(-dt/tau).
    """
    kw, kt = jax.random.split(key)
    bound = jnp.sqrt(1.0 / n_in)
    weight = jax.random.uniform(kw, (n_out, n_in), minval=-bound, maxval=bound,
                                dtype=jnp.float32)
    bias = jnp.zeros((n_out,), jnp.float32)
    tau = jax.random.uniform(kt, (n_out,), minval=tau_min, maxval=tau_max,
                             dtype=jnp.float32)
    decay = jnp.exp(-dt / tau)
    return weight, bias, decay


def _li_reference(xs, weight, bias, decay, u0):
    """Plain-JAX reference, time-major (T, B, n_out)."""
    u = u0
    out = []
    for t in range(xs.shape[0]):
        current = jnp.dot(xs[t].astype(jnp.float32), weight.T,
                          precision=jax.lax.Precision.HIGHEST) + bias
        u = decay * u + (1.0 - decay) * current
        out.append(u)
    return jnp.stack(out)


if __name__ == "__main__":
    key = jax.random.PRNGKey(0)
    k1, k2, k3, k4 = jax.random.split(key, 4)

    # --- config 1: module-sized shapes (num_classes divides 128) ----------
    B, n_in, n_out, T = 8, 32, 16, 20
    xs = jax.random.normal(k1, (T, B, n_in), dtype=jnp.float32)
    u0 = jnp.zeros((B, n_out), jnp.float32)                # LI.initial_state
    weight, bias, decay = init_li_params(k2, n_in, n_out)
    params = prepare_li_params(weight, bias, decay)        # once, not per call

    us, u_T = li_sequence(xs, params, u0)                  # (B, T, n_out)
    jax.block_until_ready((us, u_T))
    ref = _li_reference(xs, weight, bias, decay, u0)       # (T, B, n_out)
    assert jnp.allclose(us, ref.transpose(1, 0, 2), atol=1e-5, rtol=1e-5)
    assert jnp.allclose(u_T, ref[-1], atol=1e-5, rtol=1e-5)

    # single-step forward (exact module signature/semantics)
    u1, s1 = li_forward(xs[0], params, u0)
    jax.block_until_ready(u1)
    assert jnp.allclose(u1, ref[0], atol=1e-5, rtol=1e-5)
    assert jnp.allclose(s1, ref[0], atol=1e-5, rtol=1e-5)

    # bf16-streamed inputs (less HBM traffic; f32 accumulate in-kernel)
    us_bf, _ = li_sequence(xs.astype(jnp.bfloat16), params, u0)
    jax.block_until_ready(us_bf)
    assert jnp.allclose(us_bf, ref.transpose(1, 0, 2), atol=3e-2, rtol=3e-2)

    # --- config 2: num_classes NOT dividing 128, ragged sequence ----------
    B2, n_in2, n_out2, T2 = 8, 32, 10, 13
    xs2 = jax.random.normal(k3, (T2, B2, n_in2), dtype=jnp.float32)
    u02 = jnp.zeros((B2, n_out2), jnp.float32)
    w2, b2, d2 = init_li_params(k4, n_in2, n_out2)
    p2 = prepare_li_params(w2, b2, d2)
    us2, u_T2 = li_sequence(xs2, p2, u02)
    jax.block_until_ready(us2)
    ref2 = _li_reference(xs2, w2, b2, d2, u02)
    assert jnp.allclose(us2, ref2.transpose(1, 0, 2), atol=1e-5, rtol=1e-5)
    assert jnp.allclose(u_T2, ref2[-1], atol=1e-5, rtol=1e-5)

    # --- config 3: multiple grid steps (state carry across chunks) --------
    T3 = 40
    xs3 = jax.random.normal(k1, (T3, B, n_in), dtype=jnp.float32)
    us3, u_T3 = li_sequence(xs3, params, u0, block_timesteps=16)   # G = 3
    jax.block_until_ready(us3)
    ref3 = _li_reference(xs3, weight, bias, decay, u0)
    assert jnp.allclose(us3, ref3.transpose(1, 0, 2), atol=1e-5, rtol=1e-5)
    assert jnp.allclose(u_T3, ref3[-1], atol=1e-5, rtol=1e-5)

    print("KERNEL_OK")
</pallas_src>

<mosaic_0001>
module attributes {stable_mosaic.version = 11 : i64} {
  func.func @_li_kernel(%arg0: i32, %arg1: memref<192x32xf32, #tpu.memory_space<vmem>>, %arg2: memref<32x16xf32, #tpu.memory_space<vmem>>, %arg3: memref<3x16xf32, #tpu.memory_space<vmem>>, %arg4: memref<8x16xf32, #tpu.memory_space<vmem>>, %arg5: memref<8x384xf32, #tpu.memory_space<vmem>>, %arg6: memref<8x16xf32, #tpu.memory_space<vmem>>) attributes {dimension_semantics = [#tpu.dimension_semantics<arbitrary>], iteration_bounds = array<i64: 1>, scalar_prefetch = 0 : i64, scratch_operands = 1 : i64, tpu.core_type = #tpu.core_type<tc>, window_params = [{transform_indices = @transform_0, window_bounds = array<i64: 192, 32>}, {pipeline_mode = #tpu.pipeline_mode<synchronous>, transform_indices = @transform_1, window_bounds = array<i64: 32, 16>}, {pipeline_mode = #tpu.pipeline_mode<synchronous>, transform_indices = @transform_2, window_bounds = array<i64: 3, 16>}, {pipeline_mode = #tpu.pipeline_mode<synchronous>, transform_indices = @transform_3, window_bounds = array<i64: 8, 16>}, {transform_indices = @transform_4, window_bounds = array<i64: 8, 384>}]} {
    %c0_i32 = arith.constant 0 : i32
    %0 = arith.cmpi eq, %arg0, %c0_i32 : i32
    %1 = arith.extui %0 : i1 to i32
    %c0_i32_0 = arith.constant 0 : i32
    %2 = arith.cmpi ne, %1, %c0_i32_0 : i32
    scf.if %2 {
      %c0_16 = arith.constant 0 : index
      %c0_17 = arith.constant 0 : index
      %144 = vector.load %arg4[%c0_16, %c0_17] : memref<8x16xf32, #tpu.memory_space<vmem>>, vector<8x16xf32>
      %c0_18 = arith.constant 0 : index
      %c0_19 = arith.constant 0 : index
      %145 = vector.load %arg6[%c0_18, %c0_19] : memref<8x16xf32, #tpu.memory_space<vmem>>, vector<8x16xf32>
      tpu.vector_store %arg6[%c0_18, %c0_19], %144 {strides = array<i32>} : memref<8x16xf32, #tpu.memory_space<vmem>>, vector<8x16xf32>,
    } else {
    }
    %c0 = arith.constant 0 : index
    %c0_1 = arith.constant 0 : index
    %3 = vector.load %arg1[%c0, %c0_1] : memref<192x32xf32, #tpu.memory_space<vmem>>, vector<192x32xf32>
    %c0_2 = arith.constant 0 : index
    %c0_3 = arith.constant 0 : index
    %4 = vector.load %arg2[%c0_2, %c0_3] : memref<32x16xf32, #tpu.memory_space<vmem>>, vector<32x16xf32>
    %cst = arith.constant dense<0.000000e+00> : vector<192x16xf32>
    %5 = tpu.matmul %3, %4, %cst {dimension_numbers = #tpu.dot_dimension_numbers<[1], [0], [0], [1], [0, 0, 1, 1], [], []>, precision = #tpu.contract_precision<fp32>} : vector<192x32xf32>, vector<32x16xf32>, vector<192x16xf32> -> vector<192x16xf32>
    %c0_4 = arith.constant 0 : index
    %c0_5 = arith.constant 0 : index
    %6 = vector.load %arg3[%c0_4, %c0_5] : memref<3x16xf32, #tpu.memory_space<vmem>>, vector<1x16xf32>
    %7 = vector.shape_cast %6 : vector<1x16xf32> to vector<1x16xf32>
    %8 = vector.broadcast %7 : vector<1x16xf32> to vector<8x16xf32>
    %c1 = arith.constant 1 : index
    %c0_6 = arith.constant 0 : index
    %9 = vector.load %arg3[%c1, %c0_6] : memref<3x16xf32, #tpu.memory_space<vmem>>, vector<1x16xf32>
    %10 = vector.shape_cast %9 : vector<1x16xf32> to vector<1x16xf32>
    %11 = vector.broadcast %10 : vector<1x16xf32> to vector<8x16xf32>
    %c2 = arith.constant 2 : index
    %c0_7 = arith.constant 0 : index
    %12 = vector.load %arg3[%c2, %c0_7] : memref<3x16xf32, #tpu.memory_space<vmem>>, vector<1x16xf32>
    %13 = vector.shape_cast %12 : vector<1x16xf32> to vector<1x16xf32>
    %14 = vector.broadcast %13 : vector<1x16xf32> to vector<8x16xf32>
    %15 = arith.mulf %14, %8 : vector<8x16xf32>
    %c0_8 = arith.constant 0 : index
    %c0_9 = arith.constant 0 : index
    %16 = vector.load %arg6[%c0_8, %c0_9] : memref<8x16xf32, #tpu.memory_space<vmem>>, vector<8x16xf32>
    %17 = vector.extract_strided_slice %5 {offsets = [0, 0], sizes = [8, 16], strides = [1, 1]} : vector<192x16xf32> to vector<8x16xf32>
    %18 = arith.mulf %11, %16 : vector<8x16xf32>
    %19 = arith.mulf %14, %17 : vector<8x16xf32>
    %20 = arith.addf %19, %15 : vector<8x16xf32>
    %21 = arith.addf %18, %20 : vector<8x16xf32>
    %22 = vector.extract_strided_slice %5 {offsets = [8, 0], sizes = [8, 16], strides = [1, 1]} : vector<192x16xf32> to vector<8x16xf32>
    %23 = arith.mulf %11, %21 : vector<8x16xf32>
    %24 = arith.mulf %14, %22 : vector<8x16xf32>
    %25 = arith.addf %24, %15 : vector<8x16xf32>
    %26 = arith.addf %23, %25 : vector<8x16xf32>
    %27 = vector.extract_strided_slice %5 {offsets = [16, 0], sizes = [8, 16], strides = [1, 1]} : vector<192x16xf32> to vector<8x16xf32>
    %28 = arith.mulf %11, %26 : vector<8x16xf32>
    %29 = arith.mulf %14, %27 : vector<8x16xf32>
    %30 = arith.addf %29, %15 : vector<8x16xf32>
    %31 = arith.addf %28, %30 : vector<8x16xf32>
    %32 = vector.extract_strided_slice %5 {offsets = [24, 0], sizes = [8, 16], strides = [1, 1]} : vector<192x16xf32> to vector<8x16xf32>
    %33 = arith.mulf %11, %31 : vector<8x16xf32>
    %34 = arith.mulf %14, %32 : vector<8x16xf32>
    %35 = arith.addf %34, %15 : vector<8x16xf32>
    %36 = arith.addf %33, %35 : vector<8x16xf32>
    %37 = vector.extract_strided_slice %5 {offsets = [32, 0], sizes = [8, 16], strides = [1, 1]} : vector<192x16xf32> to vector<8x16xf32>
    %38 = arith.mulf %11, %36 : vector<8x16xf32>
    %39 = arith.mulf %14, %37 : vector<8x16xf32>
    %40 = arith.addf %39, %15 : vector<8x16xf32>
    %41 = arith.addf %38, %40 : vector<8x16xf32>
    %42 = vector.extract_strided_slice %5 {offsets = [40, 0], sizes = [8, 16], strides = [1, 1]} : vector<192x16xf32> to vector<8x16xf32>
    %43 = arith.mulf %11, %41 : vector<8x16xf32>
    %44 = arith.mulf %14, %42 : vector<8x16xf32>
    %45 = arith.addf %44, %15 : vector<8x16xf32>
    %46 = arith.addf %43, %45 : vector<8x16xf32>
    %47 = vector.extract_strided_slice %5 {offsets = [48, 0], sizes = [8, 16], strides = [1, 1]} : vector<192x16xf32> to vector<8x16xf32>
    %48 = arith.mulf %11, %46 : vector<8x16xf32>
    %49 = arith.mulf %14, %47 : vector<8x16xf32>
    %50 = arith.addf %49, %15 : vector<8x16xf32>
    %51 = arith.addf %48, %50 : vector<8x16xf32>
    %52 = vector.extract_strided_slice %5 {offsets = [56, 0], sizes = [8, 16], strides = [1, 1]} : vector<192x16xf32> to vector<8x16xf32>
    %53 = arith.mulf %11, %51 : vector<8x16xf32>
    %54 = arith.mulf %14, %52 : vector<8x16xf32>
    %55 = arith.addf %54, %15 : vector<8x16xf32>
    %56 = arith.addf %53, %55 : vector<8x16xf32>
    %57 = tpu.concatenate %21, %26, %31, %36, %41, %46, %51, %56 in 1 : vector<8x16xf32>, vector<8x16xf32>, vector<8x16xf32>, vector<8x16xf32>, vector<8x16xf32>, vector<8x16xf32>, vector<8x16xf32>, vector<8x16xf32> -> vector<8x128xf32>
    %c0_10 = arith.constant 0 : index
    %c0_11 = arith.constant 0 : index
    %58 = vector.load %arg5[%c0_10, %c0_11] : memref<8x384xf32, #tpu.memory_space<vmem>>, vector<8x128xf32>
    tpu.vector_store %arg5[%c0_10, %c0_11], %57 {strides = array<i32>} : memref<8x384xf32, #tpu.memory_space<vmem>>, vector<8x128xf32>,
    %59 = vector.extract_strided_slice %5 {offsets = [64, 0], sizes = [8, 16], strides = [1, 1]} : vector<192x16xf32> to vector<8x16xf32>
    %60 = arith.mulf %11, %56 : vector<8x16xf32>
    %61 = arith.mulf %14, %59 : vector<8x16xf32>
    %62 = arith.addf %61, %15 : vector<8x16xf32>
    %63 = arith.addf %60, %62 : vector<8x16xf32>
    %64 = vector.extract_strided_slice %5 {offsets = [72, 0], sizes = [8, 16], strides = [1, 1]} : vector<192x16xf32> to vector<8x16xf32>
    %65 = arith.mulf %11, %63 : vector<8x16xf32>
    %66 = arith.mulf %14, %64 : vector<8x16xf32>
    %67 = arith.addf %66, %15 : vector<8x16xf32>
    %68 = arith.addf %65, %67 : vector<8x16xf32>
    %69 = vector.extract_strided_slice %5 {offsets = [80, 0], sizes = [8, 16], strides = [1, 1]} : vector<192x16xf32> to vector<8x16xf32>
    %70 = arith.mulf %11, %68 : vector<8x16xf32>
    %71 = arith.mulf %14, %69 : vector<8x16xf32>
    %72 = arith.addf %71, %15 : vector<8x16xf32>
    %73 = arith.addf %70, %72 : vector<8x16xf32>
    %74 = vector.extract_strided_slice %5 {offsets = [88, 0], sizes = [8, 16], strides = [1, 1]} : vector<192x16xf32> to vector<8x16xf32>
    %75 = arith.mulf %11, %73 : vector<8x16xf32>
    %76 = arith.mulf %14, %74 : vector<8x16xf32>
    %77 = arith.addf %76, %15 : vector<8x16xf32>
    %78 = arith.addf %75, %77 : vector<8x16xf32>
    %79 = vector.extract_strided_slice %5 {offsets = [96, 0], sizes = [8, 16], strides = [1, 1]} : vector<192x16xf32> to vector<8x16xf32>
    %80 = arith.mulf %11, %78 : vector<8x16xf32>
    %81 = arith.mulf %14, %79 : vector<8x16xf32>
    %82 = arith.addf %81, %15 : vector<8x16xf32>
    %83 = arith.addf %80, %82 : vector<8x16xf32>
    %84 = vector.extract_strided_slice %5 {offsets = [104, 0], sizes = [8, 16], strides = [1, 1]} : vector<192x16xf32> to vector<8x16xf32>
    %85 = arith.mulf %11, %83 : vector<8x16xf32>
    %86 = arith.mulf %14, %84 : vector<8x16xf32>
    %87 = arith.addf %86, %15 : vector<8x16xf32>
    %88 = arith.addf %85, %87 : vector<8x16xf32>
    %89 = vector.extract_strided_slice %5 {offsets = [112, 0], sizes = [8, 16], strides = [1, 1]} : vector<192x16xf32> to vector<8x16xf32>
    %90 = arith.mulf %11, %88 : vector<8x16xf32>
    %91 = arith.mulf %14, %89 : vector<8x16xf32>
    %92 = arith.addf %91, %15 : vector<8x16xf32>
    %93 = arith.addf %90, %92 : vector<8x16xf32>
    %94 = vector.extract_strided_slice %5 {offsets = [120, 0], sizes = [8, 16], strides = [1, 1]} : vector<192x16xf32> to vector<8x16xf32>
    %95 = arith.mulf %11, %93 : vector<8x16xf32>
    %96 = arith.mulf %14, %94 : vector<8x16xf32>
    %97 = arith.addf %96, %15 : vector<8x16xf32>
    %98 = arith.addf %95, %97 : vector<8x16xf32>
    %99 = tpu.concatenate %63, %68, %73, %78, %83, %88, %93, %98 in 1 : vector<8x16xf32>, vector<8x16xf32>, vector<8x16xf32>, vector<8x16xf32>, vector<8x16xf32>, vector<8x16xf32>, vector<8x16xf32>, vector<8x16xf32> -> vector<8x128xf32>
    %c0_12 = arith.constant 0 : index
    %c128 = arith.constant 128 : index
    %100 = vector.load %arg5[%c0_12, %c128] : memref<8x384xf32, #tpu.memory_space<vmem>>, vector<8x128xf32>
    tpu.vector_store %arg5[%c0_12, %c128], %99 {strides = array<i32>} : memref<8x384xf32, #tpu.memory_space<vmem>>, vector<8x128xf32>,
    %101 = vector.extract_strided_slice %5 {offsets = [128, 0], sizes = [8, 16], strides = [1, 1]} : vector<192x16xf32> to vector<8x16xf32>
    %102 = arith.mulf %11, %98 : vector<8x16xf32>
    %103 = arith.mulf %14, %101 : vector<8x16xf32>
    %104 = arith.addf %103, %15 : vector<8x16xf32>
    %105 = arith.addf %102, %104 : vector<8x16xf32>
    %106 = vector.extract_strided_slice %5 {offsets = [136, 0], sizes = [8, 16], strides = [1, 1]} : vector<192x16xf32> to vector<8x16xf32>
    %107 = arith.mulf %11, %105 : vector<8x16xf32>
    %108 = arith.mulf %14, %106 : vector<8x16xf32>
    %109 = arith.addf %108, %15 : vector<8x16xf32>
    %110 = arith.addf %107, %109 : vector<8x16xf32>
    %111 = vector.extract_strided_slice %5 {offsets = [144, 0], sizes = [8, 16], strides = [1, 1]} : vector<192x16xf32> to vector<8x16xf32>
    %112 = arith.mulf %11, %110 : vector<8x16xf32>
    %113 = arith.mulf %14, %111 : vector<8x16xf32>
    %114 = arith.addf %113, %15 : vector<8x16xf32>
    %115 = arith.addf %112, %114 : vector<8x16xf32>
    %116 = vector.extract_strided_slice %5 {offsets = [152, 0], sizes = [8, 16], strides = [1, 1]} : vector<192x16xf32> to vector<8x16xf32>
    %117 = arith.mulf %11, %115 : vector<8x16xf32>
    %118 = arith.mulf %14, %116 : vector<8x16xf32>
    %119 = arith.addf %118, %15 : vector<8x16xf32>
    %120 = arith.addf %117, %119 : vector<8x16xf32>
    %121 = vector.extract_strided_slice %5 {offsets = [160, 0], sizes = [8, 16], strides = [1, 1]} : vector<192x16xf32> to vector<8x16xf32>
    %122 = arith.mulf %11, %120 : vector<8x16xf32>
    %123 = arith.mulf %14, %121 : vector<8x16xf32>
    %124 = arith.addf %123, %15 : vector<8x16xf32>
    %125 = arith.addf %122, %124 : vector<8x16xf32>
    %126 = vector.extract_strided_slice %5 {offsets = [168, 0], sizes = [8, 16], strides = [1, 1]} : vector<192x16xf32> to vector<8x16xf32>
    %127 = arith.mulf %11, %125 : vector<8x16xf32>
    %128 = arith.mulf %14, %126 : vector<8x16xf32>
    %129 = arith.addf %128, %15 : vector<8x16xf32>
    %130 = arith.addf %127, %129 : vector<8x16xf32>
    %131 = vector.extract_strided_slice %5 {offsets = [176, 0], sizes = [8, 16], strides = [1, 1]} : vector<192x16xf32> to vector<8x16xf32>
    %132 = arith.mulf %11, %130 : vector<8x16xf32>
    %133 = arith.mulf %14, %131 : vector<8x16xf32>
    %134 = arith.addf %133, %15 : vector<8x16xf32>
    %135 = arith.addf %132, %134 : vector<8x16xf32>
    %136 = vector.extract_strided_slice %5 {offsets = [184, 0], sizes = [8, 16], strides = [1, 1]} : vector<192x16xf32> to vector<8x16xf32>
    %137 = arith.mulf %11, %135 : vector<8x16xf32>
    %138 = arith.mulf %14, %136 : vector<8x16xf32>
    %139 = arith.addf %138, %15 : vector<8x16xf32>
    %140 = arith.addf %137, %139 : vector<8x16xf32>
    %141 = tpu.concatenate %105, %110, %115, %120, %125, %130, %135, %140 in 1 : vector<8x16xf32>, vector<8x16xf32>, vector<8x16xf32>, vector<8x16xf32>, vector<8x16xf32>, vector<8x16xf32>, vector<8x16xf32>, vector<8x16xf32> -> vector<8x128xf32>
    %c0_13 = arith.constant 0 : index
    %c256 = arith.constant 256 : index
    %142 = vector.load %arg5[%c0_13, %c256] : memref<8x384xf32, #tpu.memory_space<vmem>>, vector<8x128xf32>
    tpu.vector_store %arg5[%c0_13, %c256], %141 {strides = array<i32>} : memref<8x384xf32, #tpu.memory_space<vmem>>, vector<8x128xf32>,
    %c0_14 = arith.constant 0 : index
    %c0_15 = arith.constant 0 : index
    %143 = vector.load %arg6[%c0_14, %c0_15] : memref<8x16xf32, #tpu.memory_space<vmem>>, vector<8x16xf32>
    tpu.vector_store %arg6[%c0_14, %c0_15], %140 {strides = array<i32>} : memref<8x16xf32, #tpu.memory_space<vmem>>, vector<8x16xf32>,
    return
  }
  func.func @transform_0(%arg0: i32) -> (i32, i32) {
    %c0_i32 = arith.constant 0 : i32
    %c0_i32_0 = arith.constant 0 : i32
    return %arg0, %c0_i32 : i32, i32
  }
  func.func @transform_1(%arg0: i32) -> (i32, i32) {
    %c0_i32 = arith.constant 0 : i32
    %c0_i32_0 = arith.constant 0 : i32
    %c0_i32_1 = arith.constant 0 : i32
    return %c0_i32, %c0_i32_0 : i32, i32
  }
  func.func @transform_2(%arg0: i32) -> (i32, i32) {
    %c0_i32 = arith.constant 0 : i32
    %c0_i32_0 = arith.constant 0 : i32
    %c0_i32_1 = arith.constant 0 : i32
    return %c0_i32, %c0_i32_0 : i32, i32
  }
  func.func @transform_3(%arg0: i32) -> (i32, i32) {
    %c0_i32 = arith.constant 0 : i32
    %c0_i32_0 = arith.constant 0 : i32
    %c0_i32_1 = arith.constant 0 : i32
    return %c0_i32, %c0_i32_0 : i32, i32
  }
  func.func @transform_4(%arg0: i32) -> (i32, i32) {
    %c0_i32 = arith.constant 0 : i32
    %c0_i32_0 = arith.constant 0 : i32
    return %c0_i32, %arg0 : i32, i32
  }
}

</mosaic_0001>

<bundles_post_ra>
// kernel: tpu_custom_call.1
= control target key start
LH: loop header
LB: loop body
LE: loop exit
PB: predicated region body
PF: predicated region fallthrough
CT: control target
= control target key end

     0   :  { %vm53_vm0 = vcmask 261120   ;;  %s2105_s0 = inlined_call_operand.vmem [shape: f32[160,32], index: 0, kind: input, shape index: {}]   ;;  %s2106_s1 = inlined_call_operand.vmem [shape: f32[32,16], index: 1, kind: input, shape index: {}]   ;;  %s2107_s2 = inlined_call_operand.vmem [shape: f32[3,16], index: 2, kind: input, shape index: {}]   ;;  %s2108_s3 = inlined_call_operand.vmem [shape: f32[8,16], index: 3, kind: input, shape index: {}]   ;;  %s2109_s4 = inlined_call_operand.hbm [shape: f32[8,320], index: 4, kind: output, shape index: {}]  }
   0x1   :  { %v52_v0 = vld [vmem:[%s2106_s1 + $0x18] sm:$0xff]  ;;  %v51_v1 = vld [vmem:[%s2106_s1 + $0x10] sm:$0xff]  ;;  %v50_v2 = vld [vmem:[%s2106_s1 + $0x8] sm:$0xff] }
   0x2   :  { %v1346_v3 = vand.u32 4294901760, %v52_v0  ;;  %v1348_v4 = vand.u32 4294901760, %v51_v1  ;;  %v1350_v5 = vand.u32 4294901760, %v50_v2  ;;  %v49_v6 = vld [vmem:[%s2106_s1] sm:$0xff]  ;;  %v38_v8 = vld [vmem:[%s2105_s0 + $0x68] sm:$0xff]  ;;  %v39_v13 = vld [vmem:[%s2105_s0 + $0x70] sm:$0xff] }
   0x3   :  { %v37_v7 = vld [vmem:[%s2105_s0 + $0x60] sm:$0xff]  ;;  %v1361_v9 = vand.u32 4294901760, %v49_v6  ;;  %v94_v11 = vsel %vm53_vm0, %v38_v8, 0  ;;  %v97_v21 = vsel %vm53_vm0, %v39_v13, 0 }
   0x4   :  { %v91_v10 = vsel %vm53_vm0, %v37_v7, 0  ;;  %v25_v12 = vld [vmem:[%s2105_s0] sm:$0xff]  ;;  %1259 = vmatpush.msra.mxu2 %v1346_v3  ;;  %v352_v14 = vsub.f32 %v52_v0, %v1346_v3  ;;  %v358_v16 = vsub.f32 %v51_v1, %v1348_v4  ;;  %v364_v17 = vsub.f32 %v50_v2, %v1350_v5  ;;  %139 = vmatpush.msra.mxu0 %v1346_v3 }
   0x5   :  { %v1373_v15 = vand.u32 4294901760, %v91_v10  ;;  %v1379_v18 = vsub.f32 %v49_v6, %v1361_v9  ;;  %v1381_v19 = vand.u32 4294901760, %v94_v11  ;;  %v55_v20 = vsel %vm53_vm0, %v25_v12, 0 }
   0x6   :  { %1260 = vmatpush.msra.mxu2 %v1348_v4  ;;  %v353_v22 = vand.u32 4294901760, %v352_v14  ;;  %v359_v24 = vand.u32 4294901760, %v358_v16  ;;  %v365_v25 = vand.u32 4294901760, %v364_v17  ;;  %141 = vmatpush.msra.mxu0 %v1348_v4  ;;  %v1394_v28 = vand.u32 4294901760, %v55_v20 }
   0x7   :  { %v1387_v23 = vsub.f32 %v91_v10, %v1373_v15  ;;  %v371_v26 = vand.u32 4294901760, %v1379_v18  ;;  %v1392_v27 = vsub.f32 %v94_v11, %v1381_v19 }
   0x8   :  { %1261 = vmatpush.msra.mxu2 %v1350_v5  ;;  %v354_v29 = vsub.f32 %v352_v14, %v353_v22  ;;  %v360_v31 = vsub.f32 %v358_v16, %v359_v24  ;;  %v366_v32 = vsub.f32 %v364_v17, %v365_v25  ;;  %143 = vmatpush.msra.mxu0 %v1350_v5 }
   0x9   :  { %v2118_v30 = vand.u32 4294901760, %v1387_v23 }
   0xa   :  { %9 = vsyncpa [#allocation4], 0  ;;  %v372_v33 = vsub.f32 %v1379_v18, %v371_v26  ;;  %v1403_v34 = vsub.f32 %v55_v20, %v1394_v28  ;;  %v1405_v35 = vand.u32 4294901760, %v97_v21  ;;  %v26_v36 = vld [vmem:[%s2105_s0 + $0x8] sm:$0xff]  ;;  %v27_v37 = vld [vmem:[%s2105_s0 + $0x10] sm:$0xff]  ;;  %1262 = vmatpush.msra.mxu2 %v1361_v9  ;;  %v355_v38 = vand.u32 4294901760, %v354_v29  ;;  %145 = vmatpush.msra.mxu0 %v1361_v9 }
   0xb   :  { %v245_v39 = vsub.f32 %v1387_v23, %v2118_v30  ;;  %v361_v40 = vand.u32 4294901760, %v360_v31  ;;  %v2117_v41 = vand.u32 4294901760, %v1392_v27  ;;  %v367_v44 = vand.u32 4294901760, %v366_v32  ;;  %v40_v46 = vld [vmem:[%s2105_s0 + $0x78] sm:$0xff]  ;;  %v41_v1 = vld [vmem:[%s2105_s0 + $0x80] sm:$0xff]  ;;  %s1305_s23 = smov 32  }
   0xc   :  { %486 = vmatpush.msrb.mxu2 %v352_v14  ;;  %v148_v42 = vand.u32 4294901760, %v1403_v34  ;;  %797 = vmatpush.msrb.mxu0 %v353_v22  ;;  %v58_v45 = vsel %vm53_vm0, %v26_v36, 0  ;;  %v61_v47 = vsel %vm53_vm0, %v27_v37, 0  ;;  %v373_v50 = vand.u32 4294901760, %v372_v33  ;;  %v28_v57 = vld [vmem:[%s2105_s0 + $0x18] sm:$0xff]  ;;  %v29_v11 = vld [vmem:[%s2105_s0 + $0x20] sm:$0xff] }
   0xd   :  { %1263 = vmatpush.msra.mxu3 %v355_v38  ;;  %v246_v43 = vand.u32 4294901760, %v245_v39  ;;  %356 = vmatpush.msra.mxu1 %v355_v38  ;;  %v1428_v49 = vand.u32 4294901760, %v58_v45  ;;  %v253_v51 = vsub.f32 %v1392_v27, %v2117_v41  ;;  %v1434_v52 = vsub.f32 %v97_v21, %v1405_v35  ;;  %v43_v37 = vld [vmem:[%s2105_s0 + $0x90] sm:$0xff]  ;;  %v36_v41 = vld [vmem:[%s2105_s0 + $0x58] sm:$0xff]  ;;  %s1306_s24 = smov 48   ;;  %s1307_s25 = smov 64  }
   0xe   :  { %v149_v48 = vsub.f32 %v1403_v34, %v148_v42  ;;  %489 = vmatpush.msrb.mxu2 %v358_v16  ;;  %801 = vmatpush.msrb.mxu0 %v359_v24  ;;  %v1436_v53 = vand.u32 4294901760, %v61_v47  ;;  %v100_v56 = vsel %vm53_vm0, %v40_v46, 0  ;;  %v64_v63 = vsel %vm53_vm0, %v28_v57, 0  ;;  %v31_v46 = vld [vmem:[%s2105_s0 + $0x30] sm:$0xff]  ;;  %v44_v57 = vld [vmem:[%s2105_s0 + $0x98] sm:$0xff]  ;;  %s1308_s26 = smov 80  }
   0xf   :  { %247 = vmatmul.f32.vlgmr.msra.gmra.mxu2 %v246_v43  ;;  %1264 = vmatpush.msra.mxu3 %v361_v40  ;;  %v1439_v55 = vsub.f32 %v58_v45, %v1428_v49  ;;  %v254_v60 = vand.u32 4294901760, %v253_v51  ;;  %v2116_v61 = vand.u32 4294901760, %v1434_v52  ;;  %v1450_v62 = vand.u32 4294901760, %v100_v56  ;;  %s1309_s27 = smov 96   ;;  %s1310_s28 = smov 112  }
  0x10   :  { %362 = vmatpush.msra.mxu1 %v361_v40  ;;  %v150_v54 = vand.u32 4294901760, %v149_v48  ;;  %492 = vmatpush.msrb.mxu2 %v364_v17  ;;  %v1447_v59 = vsub.f32 %v61_v47, %v1436_v53  ;;  %v1465_v7 = vand.u32 4294901760, %v64_v63  ;;  %v67_v17 = vsel %vm53_vm0, %v29_v11, 0  ;;  %s1311_s29 = smov [#allocation3]   ;;  %s1250_s6 = sshll.u32 %s2109_s4, 4  ;;  %s1251_s6 = int_to_ptr.hbm [resolvable:$true] %s1250_s6 }
  0x11   :  { %1265 = vmatpush.msra.mxu3 %v367_v44  ;;  %805 = vmatpush.msrb.mxu0 %v365_v25  ;;  %v156_v58 = vand.u32 4294901760, %v1439_v55  ;;  %v261_v8 = vsub.f32 %v1434_v52, %v2116_v61  ;;  %v1473_v10 = vsub.f32 %v100_v56, %v1450_v62  ;;  %v1501_v21 = vand.u32 4294901760, %v67_v17  ;;  %v30_v25 = vld [vmem:[%s2105_s0 + $0x28] sm:$0xff]  ;;  %s1248_s1 = sshll.u32 %s1311_s29, 4  ;;  %s1249_s1 = int_to_ptr.vmem [resolvable:$true] %s1248_s1 }
  0x12   :  { %368 = vmatpush.msra.mxu1 %v367_v44  ;;  %151 = vmatmul.f32.vlgmr.msra.gmra.mxu0 %v150_v54  ;;  %v164_v6 = vand.u32 4294901760, %v1447_v59  ;;  %v1486_v13 = vsub.f32 %v64_v63, %v1465_v7  ;;  %v70_v36 = vsel %vm53_vm0, %v30_v25, 0  ;;  %v109_v45 = vsel %vm53_vm0, %v43_v37, 0 }
  0x13   :  { %1266 = vmatpush.msra.mxu3 %v373_v50  ;;  %495 = vmatpush.msrb.mxu2 %v1379_v18  ;;  %v157_v0 = vsub.f32 %v1439_v55, %v156_v58  ;;  %v262_v14 = vand.u32 4294901760, %v261_v8  ;;  %v2115_v16 = vand.u32 4294901760, %v1473_v10  ;;  %v42_v18 = vld [vmem:[%s2105_s0 + $0x88] sm:$0xff]  ;;  %v1517_v29 = vsub.f32 %v67_v17, %v1501_v21 }
  0x14   :  { %424 = vmatmul.f32.vlgmr.msra.gmra.mxu3 %v1373_v15  ;;  %374 = vmatpush.msra.mxu1 %v373_v50  ;;  %v165_v12 = vsub.f32 %v1447_v59, %v164_v6  ;;  %v172_v20 = vand.u32 4294901760, %v1486_v13  ;;  %v1529_v40 = vand.u32 4294901760, %v70_v36  ;;  %v1548_v54 = vand.u32 4294901760, %v109_v45 }
  0x15   :  { %630 = vmatpush.msrb.mxu3 %v1346_v3  ;;  %376 = vmatmul.f32.vlgmr.msra.gmra.mxu1 %v1394_v28  ;;  %v158_v2 = vand.u32 4294901760, %v157_v0  ;;  %v269_v22 = vsub.f32 %v1473_v10, %v2115_v16  ;;  %v180_v39 = vand.u32 4294901760, %v1517_v29  ;;  %v73_v56 = vsel %vm53_vm0, %v31_v46, 0 }
  0x16   :  { %920 = vmatpush.msrb.mxu1 %v1346_v3  ;;  %809 = vmatpush.msrb.mxu0 %v371_v26  ;;  %v103_v3 = vsel %vm53_vm0, %v41_v1, 0  ;;  %v173_v26 = vsub.f32 %v1486_v13, %v172_v20  ;;  %v1545_v48 = vsub.f32 %v70_v36, %v1529_v40  ;;  %v1557_v0 = vand.u32 4294901760, %v73_v56 }
  0x17   :  { %255 = vmatmul.f32.gmra.mxu2 %v254_v60  ;;  %632 = vmatpush.msrb.mxu3 %v1348_v4  ;;  %v270_v31 = vand.u32 4294901760, %v269_v22  ;;  %v181_v47 = vsub.f32 %v1517_v29, %v180_v39  ;;  %v112_v8 = vsel %vm53_vm0, %v44_v57, 0  ;;  %v45_v22 = vld [vmem:[%s2105_s0 + $0xa0] sm:$0xff]  ;;  %v46_v57 = vld [vmem:[%s2105_s0 + $0xa8] sm:$0xff]  ;;  %vm23_vm1 = vcmask 130048  }
  0x18   :  { %922 = vmatpush.msrb.mxu1 %v1348_v4  ;;  %v1490_v4 = vand.u32 4294901760, %v103_v3  ;;  %v174_v38 = vand.u32 4294901760, %v173_v26  ;;  %v188_v63 = vand.u32 4294901760, %v1545_v48  ;;  %v115_v37 = vsel %vm53_vm0, %v45_v22, 0 }
  0x19   :  { %634 = vmatpush.msrb.mxu3 %v1350_v5  ;;  %v182_v60 = vand.u32 4294901760, %v181_v47  ;;  %vm1095_vm2 = vcmask 392192   ;;  %vm1097_vm3 = vcmask 523264   ;;  %vm1099_vm4 = vcmask 654336  }
  0x1a   :  { %159 = vmatmul.f32.gmra.mxu0 %v158_v2  ;;  %924 = vmatpush.msrb.mxu1 %v1350_v5  ;;  %v166_v5 = vand.u32 4294901760, %v165_v12  ;;  %v1507_v24 = vsub.f32 %v103_v3, %v1490_v4  ;;  %v1563_v2 = vsub.f32 %v109_v45, %v1548_v54  ;;  %v32_v3 = vld [vmem:[%s2105_s0 + $0x38] sm:$0xff]  ;;  %v189_v11 = vsub.f32 %v1545_v48, %v188_v63 }
  0x1b   :  { %636 = vmatpush.msrb.mxu3 %v1361_v9  ;;  %v1573_v12 = vsub.f32 %v73_v56, %v1557_v0  ;;  %vm1103_vm5 = vcmask 916480   ;;  %vm1101_vm6 = vcmask 785408  }
  0x1c   :  { %428 = vmatmul.f32.gmra.mxu3 %v1381_v19  ;;  %926 = vmatpush.msrb.mxu1 %v1361_v9  ;;  %v106_v9 = vsel %vm53_vm0, %v42_v18, 0  ;;  %v2114_v32 = vand.u32 4294901760, %v1507_v24  ;;  %v2111_v17 = vand.u32 4294901760, %v1563_v2  ;;  %v1576_v18 = vand.u32 4294901760, %v112_v8 }
  0x1d   :  { %380 = vmatmul.f32.gmra.mxu1 %v1428_v49  ;;  %v1520_v33 = vand.u32 4294901760, %v106_v9  ;;  %v2123_v25 = vand.u32 4294901760, %v1573_v12 }
  0x1e   :  { %v277_v43 = vsub.f32 %v1507_v24, %v2114_v32  ;;  %v1591_v36 = vsub.f32 %v112_v8, %v1576_v18 }
  0x1f   :  { %263 = vmatmul.f32.gmra.mxu2 %v262_v14  ;;  %v1535_v44 = vsub.f32 %v106_v9, %v1520_v33  ;;  %v190_v9 = vand.u32 4294901760, %v189_v11 }
  0x20   :  { %v278_v50 = vand.u32 4294901760, %v277_v43  ;;  %v197_v43 = vsub.f32 %v1573_v12, %v2123_v25  ;;  %v2110_v47 = vand.u32 4294901760, %v1591_v36 }
  0x21   :  { %v2112_v51 = vand.u32 4294901760, %v1535_v44 }
  0x22   :  { %167 = vmatmul.f32.gmra.mxu0 %v166_v5  ;;  %v76_v5 = vsel %vm53_vm0, %v32_v3, 0  ;;  %v301_v3 = vsub.f32 %v1591_v36, %v2110_v47 }
  0x23   :  { %v285_v1 = vsub.f32 %v1535_v44, %v2112_v51  ;;  %v1585_v26 = vand.u32 4294901760, %v76_v5 }
  0x24   :  { %432 = vmatmul.f32.gmra.mxu3 %v1405_v35 }
  0x25   :  { %384 = vmatmul.f32.gmra.mxu1 %v1436_v53  ;;  %v286_v14 = vand.u32 4294901760, %v285_v1  ;;  %v1601_v45 = vsub.f32 %v76_v5, %v1585_v26  ;;  %v34_v5 = vld [vmem:[%s2105_s0 + $0x48] sm:$0xff] }
  0x27   :  { %271 = vmatmul.f32.gmra.mxu2 %v270_v31  ;;  %v293_v31 = vsub.f32 %v1563_v2, %v2111_v17  ;;  %v2121_v1 = vand.u32 4294901760, %v1601_v45  ;;  %v35_v17 = vld [vmem:[%s2105_s0 + $0x50] sm:$0xff] }
  0x29   :  { %v294_v46 = vand.u32 4294901760, %v293_v31  ;;  %v205_v22 = vsub.f32 %v1601_v45, %v2121_v1  ;;  %v302_v31 = vand.u32 4294901760, %v301_v3 }
  0x2a   :  { %175 = vmatmul.f32.gmra.mxu0 %v174_v38  ;;  %v33_v38 = vld [vmem:[%s2105_s0 + $0x40] sm:$0xff] }
  0x2b   :  { %v79_v56 = vsel %vm53_vm0, %v33_v38, 0 }
  0x2c   :  { %436 = vmatmul.f32.gmra.mxu3 %v1450_v62  ;;  %v1613_v8 = vand.u32 4294901760, %v79_v56 }
  0x2d   :  { %388 = vmatmul.f32.gmra.mxu1 %v1465_v7 }
  0x2f   :  { %279 = vmatmul.f32.gmra.mxu2 %v278_v50  ;;  %v1604_v50 = vand.u32 4294901760, %v115_v37 }
  0x31   :  { %v1619_v11 = vsub.f32 %v115_v37, %v1604_v50  ;;  %v82_v37 = vsel %vm53_vm0, %v34_v5, 0 }
  0x32   :  { %183 = vmatmul.f32.gmra.mxu0 %v182_v60  ;;  %v198_v60 = vand.u32 4294901760, %v197_v43 }
  0x33   :  { %v2113_v38 = vand.u32 4294901760, %v1619_v11 }
  0x34   :  { %440 = vmatmul.f32.gmra.mxu3 %v1490_v4 }
  0x35   :  { %392 = vmatmul.f32.gmra.mxu1 %v1501_v21  ;;  %v309_v3 = vsub.f32 %v1619_v11, %v2113_v38 }
  0x37   :  { %287 = vmatmul.f32.gmra.mxu2 %v286_v14  ;;  %v118_v14 = vsel %vm53_vm0, %v46_v57, 0  ;;  %v206_v57 = vand.u32 4294901760, %v205_v22  ;;  %v310_v51 = vand.u32 4294901760, %v309_v3 }
  0x38   :  { %v1632_v43 = vand.u32 4294901760, %v118_v14 }
  0x3a   :  { %191 = vmatmul.f32.gmra.mxu0 %v190_v9  ;;  %v1629_v9 = vsub.f32 %v79_v56, %v1613_v8  ;;  %v1641_v56 = vand.u32 4294901760, %v82_v37  ;;  %v1647_v5 = vsub.f32 %v118_v14, %v1632_v43  ;;  %v85_v14 = vsel %vm53_vm0, %v35_v17, 0 }
  0x3c   :  { %444 = vmatmul.f32.gmra.mxu3 %v1520_v33  ;;  %v2119_v38 = vand.u32 4294901760, %v1647_v5 }
  0x3d   :  { %396 = vmatmul.f32.gmra.mxu1 %v1529_v40 }
  0x3e   :  { %v317_v3 = vsub.f32 %v1647_v5, %v2119_v38 }
  0x3f   :  { %295 = vmatmul.f32.gmra.mxu2 %v294_v46  ;;  %v47_v46 = vld [vmem:[%s2105_s0 + $0xb0] sm:$0xff] }
  0x40   :  { %v121_v47 = vsel %vm53_vm0, %v47_v46, 0  ;;  %v48_v46 = vld [vmem:[%s2105_s0 + $0xb8] sm:$0xff]  ;;  %v318_v30 = vand.u32 4294901760, %v317_v3 }
  0x41   :  { %v1660_v32 = vand.u32 4294901760, %v121_v47  ;;  %v124_v61 = vsel %vm53_vm0, %v48_v46, 0 }
  0x42   :  { %199 = vmatmul.f32.gmra.mxu0 %v198_v60  ;;  %v2120_v60 = vand.u32 4294901760, %v1629_v9 }
  0x43   :  { %v1675_v17 = vsub.f32 %v121_v47, %v1660_v32  ;;  %v88_v47 = vsel %vm53_vm0, %v36_v41, 0 }
  0x44   :  { %448 = vmatmul.f32.gmra.mxu3 %v1548_v54  ;;  %v213_v22 = vsub.f32 %v1629_v9, %v2120_v60  ;;  %v1688_v60 = vand.u32 4294901760, %v124_v61  ;;  %v1694_v1 = vand.u32 4294901760, %v88_v47 }
  0x45   :  { %400 = vmatmul.f32.gmra.mxu1 %v1557_v0  ;;  %v2124_v38 = vand.u32 4294901760, %v1675_v17 }
  0x46   :  { %v1700_v3 = vsub.f32 %v124_v61, %v1688_v60 }
  0x47   :  { %303 = vmatmul.f32.gmra.mxu2 %v302_v31  ;;  %v1657_v31 = vsub.f32 %v82_v37, %v1641_v56  ;;  %v1669_v37 = vand.u32 4294901760, %v85_v14 }
  0x48   :  { %v2125_v25 = vand.u32 4294901760, %v1700_v3 }
  0x49   :  { %v2122_v16 = vand.u32 4294901760, %v1657_v31 }
  0x4a   :  { %207 = vmatmul.f32.gmra.mxu0 %v206_v57  ;;  %v214_v57 = vand.u32 4294901760, %v213_v22  ;;  %v333_v61 = vsub.f32 %v1700_v3, %v2125_v25 }
  0x4b   :  { %v221_v22 = vsub.f32 %v1657_v31, %v2122_v16  ;;  %v1706_v16 = vsub.f32 %v88_v47, %v1694_v1 }
  0x4c   :  { %452 = vmatmul.f32.gmra.mxu3 %v1576_v18 }
  0x4d   :  { %404 = vmatmul.f32.gmra.mxu1 %v1585_v26  ;;  %v222_v46 = vand.u32 4294901760, %v221_v22 }
  0x4f   :  { %311 = vmatmul.f32.gmra.mxu2 %v310_v51  ;;  %v1685_v51 = vsub.f32 %v85_v14, %v1669_v37  ;;  %v325_v14 = vsub.f32 %v1675_v17, %v2124_v38  ;;  %v236_v38 = vand.u32 4294901760, %v1706_v16 }
  0x51   :  { %v326_v22 = vand.u32 4294901760, %v325_v14  ;;  %v237_v47 = vsub.f32 %v1706_v16, %v236_v38 }
  0x52   :  { %215 = vmatmul.f32.gmra.mxu0 %v214_v57  ;;  %v228_v57 = vand.u32 4294901760, %v1685_v51 }
  0x53   :  { %v238_v14 = vand.u32 4294901760, %v237_v47 }
  0x54   :  { %456 = vmatmul.f32.gmra.mxu3 %v1604_v50  ;;  %v229_v41 = vsub.f32 %v1685_v51, %v228_v57 }
  0x55   :  { %408 = vmatmul.f32.gmra.mxu1 %v1613_v8 }
  0x57   :  { %319 = vmatmul.f32.gmra.mxu2 %v318_v30  ;;  %v230_v30 = vand.u32 4294901760, %v229_v41 }
  0x5a   :  { %223 = vmatmul.f32.gmra.mxu0 %v222_v46  ;;  %v334_v46 = vand.u32 4294901760, %v333_v61 }
  0x5c   :  { %460 = vmatmul.f32.gmra.mxu3 %v1632_v43 }
  0x5d   :  { %412 = vmatmul.f32.gmra.mxu1 %v1641_v56 }
  0x5f   :  { %327 = vmatmul.f32.gmra.mxu2 %v326_v22  ;;  %v2127_v22 = vand.u32 4294901760, %v1601_v45 }
  0x62   :  { %231 = vmatmul.f32.gmra.mxu0 %v230_v30 }
  0x64   :  { %464 = vmatmul.f32.gmra.mxu3 %v1660_v32 }
  0x65   :  { %416 = vmatmul.f32.gmra.mxu1 %v1669_v37 }
  0x67   :  { %335 = vmatmul.f32.gmra.mxu2 %v334_v46  ;;  %v2128_v46 = vand.u32 4294901760, %v1629_v9 }
  0x6a   :  { %239 = vmatmul.f32.gmra.mxu0 %v238_v14 }
  0x6c   :  { %468 = vmatmul.f32.gmra.mxu3 %v1688_v60 }
  0x6d   :  { %420 = vmatmul.f32.gmra.mxu1 %v1694_v1 }
  0x6f   :  { %498 = vmatmul.f32.vlgmr.msrb.gmra.mxu2 %v1403_v34 }
  0x72   :  { %811 = vmatmul.f32.vlgmr.msrb.gmra.mxu0 %v1394_v28 }
  0x74   :  { %640 = vmatmul.f32.vlgmr.msrb.gmra.mxu3 %v148_v42 }
  0x75   :  { %928 = vmatmul.f32.vlgmr.msrb.gmra.mxu1 %v1394_v28 }
  0x77   :  { %503 = vmatmul.f32.gmra.mxu2 %v1439_v55 }
  0x7a   :  { %815 = vmatmul.f32.gmra.mxu0 %v1428_v49 }
  0x7c   :  { %646 = vmatmul.f32.gmra.mxu3 %v156_v58 }
  0x7d   :  { %932 = vmatmul.f32.gmra.mxu1 %v1428_v49 }
  0x7f   :  { %508 = vmatmul.f32.gmra.mxu2 %v1447_v59 }
  0x82   :  { %819 = vmatmul.f32.gmra.mxu0 %v1436_v53 }
  0x84   :  { %652 = vmatmul.f32.gmra.mxu3 %v164_v6 }
  0x85   :  { %936 = vmatmul.f32.gmra.mxu1 %v1436_v53 }
  0x87   :  { %513 = vmatmul.f32.gmra.mxu2 %v1486_v13 }
  0x8a   :  { %823 = vmatmul.f32.gmra.mxu0 %v1465_v7 }
  0x8c   :  { %658 = vmatmul.f32.gmra.mxu3 %v172_v20 }
  0x8d   :  { %940 = vmatmul.f32.gmra.mxu1 %v1465_v7 }
  0x8f   :  { %518 = vmatmul.f32.gmra.mxu2 %v1517_v29  ;;  %v1743_v28 = vpop.f32.mrf.mxu0  ;;  %v2126_v29 = vand.u32 4294901760, %v1573_v12 }
  0x92   :  { %v248_v34 = vpop.f32.mrf.mxu2  ;;  %v1745_v42 = vpop.f32.mrf.mxu1  ;;  %827 = vmatmul.f32.gmra.mxu0 %v1501_v21 }
  0x94   :  { %664 = vmatmul.f32.gmra.mxu3 %v180_v39 }
  0x95   :  { %944 = vmatmul.f32.gmra.mxu1 %v1501_v21 }
  0x97   :  { %523 = vmatmul.f32.gmra.mxu2 %v1545_v48  ;;  %v425_v49 = vpop.f32.mrf.mxu3  ;;  %v1752_v53 = vpop.f32.mrf.mxu0 }
  0x98   :  { %v1754_v55 = vadd.f32 %v425_v49, %v248_v34 }
  0x9a   :  { %v256_v58 = vpop.f32.mrf.mxu2  ;;  %v1756_v59 = vpop.f32.mrf.mxu1  ;;  %831 = vmatmul.f32.gmra.mxu0 %v1529_v40 }
  0x9c   :  { %670 = vmatmul.f32.gmra.mxu3 %v188_v63 }
  0x9d   :  { %948 = vmatmul.f32.gmra.mxu1 %v1529_v40 }
  0x9f   :  { %528 = vmatmul.f32.gmra.mxu2 %v1573_v12  ;;  %v429_v6 = vpop.f32.mrf.mxu3  ;;  %v1763_v7 = vpop.f32.mrf.mxu0 }
  0xa0   :  { %v1765_v13 = vadd.f32 %v429_v6, %v256_v58  ;;  %v2129_v58 = vand.u32 4294901760, %v1657_v31 }
  0xa2   :  { %v264_v20 = vpop.f32.mrf.mxu2  ;;  %v1767_v21 = vpop.f32.mrf.mxu1  ;;  %835 = vmatmul.f32.gmra.mxu0 %v1557_v0 }
  0xa4   :  { %676 = vmatmul.f32.gmra.mxu3 %v2126_v29 }
  0xa5   :  { %952 = vmatmul.f32.gmra.mxu1 %v1557_v0 }
  0xa7   :  { %533 = vmatmul.f32.gmra.mxu2 %v1601_v45  ;;  %v433_v39 = vpop.f32.mrf.mxu3  ;;  %v1774_v40 = vpop.f32.mrf.mxu0 }
  0xa8   :  { %v1776_v48 = vadd.f32 %v433_v39, %v264_v20 }
  0xaa   :  { %v272_v63 = vpop.f32.mrf.mxu2  ;;  %v1778_v41 = vpop.f32.mrf.mxu1  ;;  %839 = vmatmul.f32.gmra.mxu0 %v1585_v26 }
  0xac   :  { %682 = vmatmul.f32.gmra.mxu3 %v2127_v22 }
  0xad   :  { %956 = vmatmul.f32.gmra.mxu1 %v1585_v26 }
  0xaf   :  { %538 = vmatmul.f32.gmra.mxu2 %v1629_v9  ;;  %v437_v0 = vpop.f32.mrf.mxu3  ;;  %v1785_v12 = vpop.f32.mrf.mxu0 }
  0xb0   :  { %v1787_v30 = vadd.f32 %v437_v0, %v272_v63 }
  0xb2   :  { %v280_v61 = vpop.f32.mrf.mxu2  ;;  %v1789_v47 = vpop.f32.mrf.mxu1  ;;  %843 = vmatmul.f32.gmra.mxu0 %v1613_v8 }
  0xb4   :  { %688 = vmatmul.f32.gmra.mxu3 %v2128_v46  ;;  %v2130_v46 = vand.u32 4294901760, %v1387_v23 }
  0xb5   :  { %960 = vmatmul.f32.gmra.mxu1 %v1613_v8 }
  0xb7   :  { %543 = vmatmul.f32.gmra.mxu2 %v1657_v31  ;;  %v441_v26 = vpop.f32.mrf.mxu3  ;;  %v1796_v45 = vpop.f32.mrf.mxu0 }
  0xb8   :  { %v1798_v14 = vadd.f32 %v441_v26, %v280_v61  ;;  %v22_v26 = vld [vmem:[%s2108_s3] sm:$0xff] }
  0xb9   :  { %24 = vst.msk [vmem:[#allocation2] sm:$0xff] %vm23_vm1, %v22_v26  ;;  %v2133_v26 = vand.u32 4294901760, %v1473_v10 }
  0xba   :  { %v288_v34 = vpop.f32.mrf.mxu2  ;;  %v1800_v49 = vpop.f32.mrf.mxu1  ;;  %847 = vmatmul.f32.gmra.mxu0 %v1641_v56 }
  0xbc   :  { %694 = vmatmul.f32.gmra.mxu3 %v2129_v58 }
  0xbd   :  { %964 = vmatmul.f32.gmra.mxu1 %v1641_v56 }
  0xbf   :  { %548 = vmatmul.f32.gmra.mxu2 %v1685_v51  ;;  %v445_v8 = vpop.f32.mrf.mxu3  ;;  %v1807_v9 = vpop.f32.mrf.mxu0 }
  0xc0   :  { %v1809_v6 = vadd.f32 %v445_v8, %v288_v34 }
  0xc2   :  { %v296_v20 = vpop.f32.mrf.mxu2  ;;  %v1811_v29 = vpop.f32.mrf.mxu1  ;;  %851 = vmatmul.f32.gmra.mxu0 %v1669_v37 }
  0xc4   :  { %700 = vmatmul.f32.gmra.mxu3 %v228_v57 }
  0xc5   :  { %968 = vmatmul.f32.gmra.mxu1 %v1669_v37 }
  0xc7   :  { %553 = vmatmul.f32.gmra.mxu2 %v1706_v16  ;;  %v449_v56 = vpop.f32.mrf.mxu3  ;;  %v1818_v31 = vpop.f32.mrf.mxu0 }
  0xc8   :  { %v1820_v39 = vadd.f32 %v449_v56, %v296_v20 }
  0xca   :  { %v304_v63 = vpop.f32.mrf.mxu2  ;;  %v1822_v22 = vpop.f32.mrf.mxu1  ;;  %855 = vmatmul.f32.gmra.mxu0 %v1694_v1 }
  0xcc   :  { %706 = vmatmul.f32.gmra.mxu3 %v236_v38 }
  0xcd   :  { %972 = vmatmul.f32.gmra.mxu1 %v1694_v1 }
  0xcf   :  { %558 = vmatmul.f32.gmra.mxu2 %v1387_v23  ;;  %v453_v37 = vpop.f32.mrf.mxu3  ;;  %v1829_v51 = vpop.f32.mrf.mxu0 }
  0xd0   :  { %v1831_v57 = vadd.f32 %v453_v37, %v304_v63  ;;  %v2132_v37 = vand.u32 4294901760, %v1434_v52 }
  0xd2   :  { %v312_v0 = vpop.f32.mrf.mxu2  ;;  %v1833_v61 = vpop.f32.mrf.mxu1  ;;  %859 = vmatmul.f32.gmra.mxu0 %v1373_v15 }
  0xd4   :  { %712 = vmatmul.f32.gmra.mxu3 %v2130_v46 }
  0xd5   :  { %976 = vmatmul.f32.gmra.mxu1 %v1373_v15  ;;  %v2131_v15 = vand.u32 4294901760, %v1392_v27 }
  0xd7   :  { %563 = vmatmul.f32.gmra.mxu2 %v1392_v27  ;;  %v457_v16 = vpop.f32.mrf.mxu3  ;;  %v1840_v1 = vpop.f32.mrf.mxu0 }
  0xd8   :  { %v1842_v38 = vadd.f32 %v457_v16, %v312_v0 }
  0xda   :  { %v320_v34 = vpop.f32.mrf.mxu2  ;;  %v1848_v58 = vpop.f32.mrf.mxu1  ;;  %863 = vmatmul.f32.gmra.mxu0 %v1381_v19 }
  0xdc   :  { %718 = vmatmul.f32.gmra.mxu3 %v2131_v15 }
  0xdd   :  { %980 = vmatmul.f32.gmra.mxu1 %v1381_v19 }
  0xdf   :  { %568 = vmatmul.f32.gmra.mxu2 %v1434_v52  ;;  %v461_v23 = vpop.f32.mrf.mxu3  ;;  %v1855_v8 = vpop.f32.mrf.mxu0 }
  0xe0   :  { %v1857_v20 = vadd.f32 %v461_v23, %v320_v34 }
  0xe2   :  { %v328_v56 = vpop.f32.mrf.mxu2  ;;  %v1859_v63 = vpop.f32.mrf.mxu1  ;;  %867 = vmatmul.f32.gmra.mxu0 %v1405_v35 }
  0xe4   :  { %724 = vmatmul.f32.gmra.mxu3 %v2132_v37  ;;  %v2134_v37 = vand.u32 4294901760, %v1507_v24 }
  0xe5   :  { %984 = vmatmul.f32.gmra.mxu1 %v1405_v35 }
  0xe7   :  { %573 = vmatmul.f32.gmra.mxu2 %v1473_v10  ;;  %v465_v19 = vpop.f32.mrf.mxu3  ;;  %v1866_v27 = vpop.f32.mrf.mxu0 }
  0xe8   :  { %v1868_v0 = vadd.f32 %v465_v19, %v328_v56  ;;  %v378_v56 = vadd.f32 %v1745_v42, %v1743_v28 }
  0xea   :  { %v336_v46 = vpop.f32.mrf.mxu2  ;;  %v1870_v16 = vpop.f32.mrf.mxu1  ;;  %871 = vmatmul.f32.gmra.mxu0 %v1450_v62 }
  0xec   :  { %730 = vmatmul.f32.gmra.mxu3 %v2133_v26 }
  0xed   :  { %988 = vmatmul.f32.gmra.mxu1 %v1450_v62 }
  0xef   :  { %578 = vmatmul.f32.gmra.mxu2 %v1507_v24  ;;  %v469_v35 = vpop.f32.mrf.mxu3  ;;  %v812_v52 = vpop.f32.mrf.mxu0 }
  0xf0   :  { %v1877_v34 = vadd.f32 %v469_v35, %v336_v46  ;;  %v1275_v46 = vld [vmem:[%s2107_s2] ss:$0 sm:$0xff]  ;;  %v1892_v35 = vld [vmem:[%s2107_s2 + $0x2] ss:$0 sm:$0xff] }
  0xf2   :  { %v499_v15 = vpop.f32.mrf.mxu2  ;;  %v929_v23 = vpop.f32.mrf.mxu1  ;;  %875 = vmatmul.f32.gmra.mxu0 %v1490_v4 }
  0xf3   :  { %v500_v10 = vadd.f32 %v499_v15, %v378_v56  ;;  %v1898_v56 = vmul.f32 %v1892_v35, %v1275_v46 }
  0xf4   :  { %736 = vmatmul.f32.gmra.mxu3 %v2134_v37  ;;  %v2135_v37 = vand.u32 4294901760, %v1535_v44 }
  0xf5   :  { %992 = vmatmul.f32.gmra.mxu1 %v1490_v4  ;;  %v382_v4 = vadd.f32 %v1756_v59, %v1752_v53 }
  0xf7   :  { %583 = vmatmul.f32.gmra.mxu2 %v1535_v44  ;;  %v641_v62 = vpop.f32.mrf.mxu3  ;;  %v816_v19 = vpop.f32.mrf.mxu0 }
  0xf8   :  { %v642_v26 = vadd.f32 %v641_v62, %v500_v10  ;;  %v1905_v10 = vld [vmem:[%s2107_s2 + $0x1] ss:$0 sm:$0xff]  ;;  %s1304_s2 = smov 16  }
  0xfa   :  { %v504_v28 = vpop.f32.mrf.mxu2  ;;  %v813_v24 = vadd.f32 %v812_v52, %v642_v26  ;;  %v933_v42 = vpop.f32.mrf.mxu1  ;;  %879 = vmatmul.f32.gmra.mxu0 %v1520_v33  ;;  %v1031_v52 = vld [vmem:[#allocation2] sm:$0xff] }
  0xfb   :  { %v505_v62 = vadd.f32 %v504_v28, %v382_v4  ;;  %v1032_v44 = vmul.f32 %v1905_v10, %v1031_v52  ;;  %v2136_v4 = vand.u32 4294901760, %v1563_v2 }
  0xfc   :  { %v930_v15 = vadd.f32 %v929_v23, %v813_v24  ;;  %742 = vmatmul.f32.gmra.mxu3 %v2135_v37 }
  0xfd   :  { %996 = vmatmul.f32.gmra.mxu1 %v1520_v33  ;;  %v386_v33 = vadd.f32 %v1767_v21, %v1763_v7 }
  0xfe   :  { %v1033_v26 = vmul.f32 %v1892_v35, %v930_v15 }
  0xff   :  { %588 = vmatmul.f32.gmra.mxu2 %v1563_v2  ;;  %v647_v53 = vpop.f32.mrf.mxu3  ;;  %v820_v59 = vpop.f32.mrf.mxu0 }
 0x100   :  { %v1034_v23 = vadd.f32 %v1033_v26, %v1898_v56  ;;  %v648_v46 = vadd.f32 %v647_v53, %v505_v62 }
 0x102   :  { %v509_v24 = vpop.f32.mrf.mxu2  ;;  %v817_v37 = vadd.f32 %v816_v19, %v648_v46  ;;  %v937_v25 = vpop.f32.mrf.mxu1  ;;  %883 = vmatmul.f32.gmra.mxu0 %v1548_v54  ;;  %v1917_v15 = vadd.f32 %v1034_v23, %v1032_v44 }
 0x103   :  { %v510_v26 = vadd.f32 %v509_v24, %v386_v33  ;;  %v2137_v24 = vand.u32 4294901760, %v1591_v36 }
 0x104   :  { %v934_v28 = vadd.f32 %v933_v42, %v817_v37  ;;  %748 = vmatmul.f32.gmra.mxu3 %v2136_v4  ;;  %v1036_v46 = vmul.f32 %v1905_v10, %v1917_v15 }
 0x105   :  { %1000 = vmatmul.f32.gmra.mxu1 %v1548_v54  ;;  %v390_v54 = vadd.f32 %v1778_v41, %v1774_v40 }
 0x106   :  { %v1037_v62 = vmul.f32 %v1892_v35, %v934_v28 }
 0x107   :  { %593 = vmatmul.f32.gmra.mxu2 %v1591_v36  ;;  %v653_v19 = vpop.f32.mrf.mxu3  ;;  %v824_v52 = vpop.f32.mrf.mxu0 }
 0x108   :  { %v654_v53 = vadd.f32 %v653_v19, %v510_v26  ;;  %v1038_v7 = vadd.f32 %v1037_v62, %v1898_v56 }
 0x10a   :  { %v514_v21 = vpop.f32.mrf.mxu2  ;;  %v821_v2 = vadd.f32 %v820_v59, %v654_v53  ;;  %v1039_v42 = vadd.f32 %v1038_v7, %v1036_v46  ;;  %v941_v23 = vpop.f32.mrf.mxu1  ;;  %887 = vmatmul.f32.gmra.mxu0 %v1576_v18  ;;  %v2138_v53 = vand.u32 4294901760, %v1619_v11 }
 0x10b   :  { %v515_v37 = vadd.f32 %v514_v21, %v390_v54 }
 0x10c   :  { %v938_v44 = vadd.f32 %v937_v25, %v821_v2  ;;  %754 = vmatmul.f32.gmra.mxu3 %v2137_v24  ;;  %1065 = vrot.lane.b32.xlu0 %v1039_v42, %s1304_s2  ;;  %v1040_v40 = vmul.f32 %v1905_v10, %v1039_v42  ;;  %v2139_v24 = vand.u32 4294901760, %v1647_v5 }
 0x10d   :  { %1004 = vmatmul.f32.gmra.mxu1 %v1576_v18  ;;  %v394_v18 = vadd.f32 %v1789_v47, %v1785_v12 }
 0x10e   :  { %v1041_v33 = vmul.f32 %v1892_v35, %v938_v44 }
 0x10f   :  { %598 = vmatmul.f32.gmra.mxu2 %v1619_v11  ;;  %v659_v59 = vpop.f32.mrf.mxu3  ;;  %v828_v28 = vpop.f32.mrf.mxu0 }
 0x110   :  { %v1042_v4 = vadd.f32 %v1041_v33, %v1898_v56  ;;  %v660_v25 = vadd.f32 %v659_v59, %v515_v37 }
 0x112   :  { %v519_v41 = vpop.f32.mrf.mxu2  ;;  %v825_v36 = vadd.f32 %v824_v52, %v660_v25  ;;  %v1043_v26 = vadd.f32 %v1042_v4, %v1040_v40  ;;  %v945_v62 = vpop.f32.mrf.mxu1  ;;  %891 = vmatmul.f32.gmra.mxu0 %v1604_v50 }
 0x113   :  { %v520_v46 = vadd.f32 %v519_v41, %v394_v18 }
 0x114   :  { %v942_v19 = vadd.f32 %v941_v23, %v825_v36  ;;  %760 = vmatmul.f32.gmra.mxu3 %v2138_v53  ;;  %1069 = vrot.lane.b32.xlu0 %v1043_v26, %s1305_s23  ;;  %v1044_v42 = vmul.f32 %v1905_v10, %v1043_v26  ;;  %v2140_v26 = vand.u32 4294901760, %v1675_v17 }
 0x115   :  { %1008 = vmatmul.f32.gmra.mxu1 %v1604_v50  ;;  %v398_v50 = vadd.f32 %v1800_v49, %v1796_v45 }
 0x116   :  { %v1045_v7 = vmul.f32 %v1892_v35, %v942_v19 }
 0x117   :  { %603 = vmatmul.f32.gmra.mxu2 %v1647_v5  ;;  %v665_v52 = vpop.f32.mrf.mxu3  ;;  %v832_v21 = vpop.f32.mrf.mxu0 }
 0x118   :  { %v666_v2 = vadd.f32 %v665_v52, %v520_v46  ;;  %v1046_v12 = vadd.f32 %v1045_v7, %v1898_v56 }
 0x11a   :  { %v524_v47 = vpop.f32.mrf.mxu2  ;;  %v829_v11 = vadd.f32 %v828_v28, %v666_v2  ;;  %v1047_v23 = vadd.f32 %v1046_v12, %v1044_v42  ;;  %v949_v54 = vpop.f32.mrf.mxu1  ;;  %895 = vmatmul.f32.gmra.mxu0 %v1632_v43  ;;  %v2141_v42 = vand.u32 4294901760, %v1700_v3 }
 0x11b   :  { %v525_v37 = vadd.f32 %v524_v47, %v398_v50 }
 0x11c   :  { %v946_v44 = vadd.f32 %v945_v62, %v829_v11  ;;  %766 = vmatmul.f32.gmra.mxu3 %v2139_v24  ;;  %1073 = vrot.lane.b32.xlu1 %v1047_v23, %s1306_s24  ;;  %v1048_v45 = vmul.f32 %v1905_v10, %v1047_v23 }
 0x11d   :  { %1012 = vmatmul.f32.gmra.mxu1 %v1632_v43  ;;  %v402_v43 = vadd.f32 %v1811_v29, %v1807_v9 }
 0x11e   :  { %v1049_v33 = vmul.f32 %v1892_v35, %v946_v44 }
 0x11f   :  { %608 = vmatmul.f32.gmra.mxu2 %v1675_v17  ;;  %v671_v59 = vpop.f32.mrf.mxu3  ;;  %v836_v28 = vpop.f32.mrf.mxu0 }
 0x120   :  { %v1050_v4 = vadd.f32 %v1049_v33, %v1898_v56  ;;  %v672_v49 = vadd.f32 %v671_v59, %v525_v37  ;;  %v410_v37 = vadd.f32 %v1833_v61, %v1829_v51  ;;  %v414_v51 = vadd.f32 %v1848_v58, %v1840_v1 }
 0x122   :  { %v529_v40 = vpop.f32.mrf.mxu2  ;;  %v833_v5 = vadd.f32 %v832_v21, %v672_v49  ;;  %v1051_v25 = vadd.f32 %v1050_v4, %v1048_v45  ;;  %v953_v41 = vpop.f32.mrf.mxu1  ;;  %899 = vmatmul.f32.gmra.mxu0 %v1660_v32 }
 0x123   :  { %v530_v62 = vadd.f32 %v529_v40, %v402_v43 }
 0x124   :  { %v950_v36 = vadd.f32 %v949_v54, %v833_v5  ;;  %772 = vmatmul.f32.gmra.mxu3 %v2140_v26  ;;  %1077 = vrot.lane.b32.xlu1 %v1051_v25, %s1307_s25  ;;  %v1052_v7 = vmul.f32 %v1905_v10, %v1051_v25 }
 0x125   :  { %1016 = vmatmul.f32.gmra.mxu1 %v1660_v32  ;;  %v406_v32 = vadd.f32 %v1822_v22, %v1818_v31 }
 0x126   :  { %v1053_v18 = vmul.f32 %v1892_v35, %v950_v36 }
 0x127   :  { %613 = vmatmul.f32.gmra.mxu2 %v1700_v3  ;;  %v677_v19 = vpop.f32.mrf.mxu3  ;;  %v840_v53 = vpop.f32.mrf.mxu0 }
 0x128   :  { %v678_v46 = vadd.f32 %v677_v19, %v530_v62  ;;  %v1054_v9 = vadd.f32 %v1053_v18, %v1898_v56 }
 0x12a   :  { %v534_v29 = vpop.f32.mrf.mxu2  ;;  %v837_v17 = vadd.f32 %v836_v28, %v678_v46  ;;  %v1055_v52 = vadd.f32 %v1054_v9, %v1052_v7  ;;  %v957_v21 = vpop.f32.mrf.mxu1  ;;  %903 = vmatmul.f32.gmra.mxu0 %v1688_v60 }
 0x12b   :  { %v535_v12 = vadd.f32 %v534_v29, %v406_v32 }
 0x12c   :  { %v954_v2 = vadd.f32 %v953_v41, %v837_v17  ;;  %778 = vmatmul.f32.gmra.mxu3 %v2141_v42  ;;  %1081 = vrot.lane.b32.xlu2 %v1055_v52, %s1308_s26  ;;  %v1056_v50 = vmul.f32 %v1905_v10, %v1055_v52  ;;  %v418_v17 = vadd.f32 %v1859_v63, %v1855_v8 }
 0x12d   :  { %1020 = vmatmul.f32.gmra.mxu1 %v1688_v60  ;;  %v422_v8 = vadd.f32 %v1870_v16, %v1866_v27 }
 0x12e   :  { %v1057_v47 = vmul.f32 %v1892_v35, %v954_v2 }
 0x12f   :  { %v683_v11 = vpop.f32.mrf.mxu3  ;;  %v844_v23 = vpop.f32.mrf.mxu0 }
 0x130   :  { %v1058_v54 = vadd.f32 %v1057_v47, %v1898_v56  ;;  %v684_v44 = vadd.f32 %v683_v11, %v535_v12 }
 0x132   :  { %v539_v31 = vpop.f32.mrf.mxu2  ;;  %v841_v22 = vadd.f32 %v840_v53, %v684_v44  ;;  %v1059_v24 = vadd.f32 %v1058_v54, %v1056_v50  ;;  %v961_v3 = vpop.f32.mrf.mxu1 }
 0x133   :  { %v540_v60 = vadd.f32 %v539_v31, %v410_v37 }
 0x134   :  { %v958_v33 = vadd.f32 %v957_v21, %v841_v22  ;;  %1085 = vrot.lane.b32.xlu2 %v1059_v24, %s1309_s27  ;;  %v1060_v49 = vmul.f32 %v1905_v10, %v1059_v24 }
 0x136   :  { %v1061_v59 = vmul.f32 %v1892_v35, %v958_v33 }
 0x137   :  { %v689_v28 = vpop.f32.mrf.mxu3  ;;  %v848_v4 = vpop.f32.mrf.mxu0 }
 0x138   :  { %v1062_v45 = vadd.f32 %v1061_v59, %v1898_v56  ;;  %v690_v40 = vadd.f32 %v689_v28, %v540_v60 }
 0x13a   :  { %v1985_v5 = vadd.f32 %v1062_v45, %v1060_v49  ;;  %v544_v25 = vpop.f32.mrf.mxu2  ;;  %v845_v41 = vadd.f32 %v844_v23, %v690_v40  ;;  %v965_v43 = vpop.f32.mrf.mxu1 }
 0x13b   :  { %v545_v36 = vadd.f32 %v544_v25, %v414_v51 }
 0x13c   :  { %v962_v61 = vadd.f32 %v961_v3, %v845_v41  ;;  %v1106_v46 = vmul.f32 %v1905_v10, %v1985_v5 }
 0x13e   :  { %v1107_v26 = vmul.f32 %v1892_v35, %v962_v61 }
 0x13f   :  { %v695_v62 = vpop.f32.mrf.mxu3  ;;  %v852_v18 = vpop.f32.mrf.mxu0 }
 0x140   :  { %v1108_v19 = vadd.f32 %v1107_v26, %v1898_v56  ;;  %v696_v53 = vadd.f32 %v695_v62, %v545_v36 }
 0x142   :  { %v549_v7 = vpop.f32.mrf.mxu2  ;;  %v849_v9 = vadd.f32 %v848_v4, %v696_v53  ;;  %v969_v29 = vpop.f32.mrf.mxu1  ;;  %v1995_v52 = vadd.f32 %v1108_v19, %v1106_v46 }
 0x143   :  { %v550_v58 = vadd.f32 %v549_v7, %v418_v17 }
 0x144   :  { %v966_v1 = vadd.f32 %v965_v43, %v849_v9  ;;  %v1110_v47 = vmul.f32 %v1905_v10, %v1995_v52 }
 0x146   :  { %v1111_v21 = vmul.f32 %v1892_v35, %v966_v1 }
 0x147   :  { %v701_v32 = vpop.f32.mrf.mxu3  ;;  %v856_v2 = vpop.f32.mrf.mxu0 }
 0x148   :  { %v1112_v42 = vadd.f32 %v1111_v21, %v1898_v56  ;;  %v702_v12 = vadd.f32 %v701_v32, %v550_v58 }
 0x14a   :  { %v554_v11 = vpop.f32.mrf.mxu2  ;;  %v853_v23 = vadd.f32 %v852_v18, %v702_v12  ;;  %v1113_v54 = vadd.f32 %v1112_v42, %v1110_v47  ;;  %v973_v50 = vpop.f32.mrf.mxu1 }
 0x14b   :  { %v555_v44 = vadd.f32 %v554_v11, %v422_v8 }
 0x14c   :  { %v970_v63 = vadd.f32 %v969_v29, %v853_v23  ;;  %1139 = vrot.lane.b32.xlu0 %v1113_v54, %s1304_s2  ;;  %v1114_v33 = vmul.f32 %v1905_v10, %v1113_v54 }
 0x14e   :  { %v1115_v31 = vmul.f32 %v1892_v35, %v970_v63 }
 0x14f   :  { %v707_v22 = vpop.f32.mrf.mxu3  ;;  %v860_v24 = vpop.f32.mrf.mxu0 }
 0x150   :  { %v1116_v3 = vadd.f32 %v1115_v31, %v1898_v56  ;;  %v708_v37 = vadd.f32 %v707_v22, %v555_v44 }
 0x152   :  { %v559_v60 = vpop.f32.mrf.mxu2  ;;  %v857_v59 = vadd.f32 %v856_v2, %v708_v37  ;;  %v1117_v28 = vadd.f32 %v1116_v3, %v1114_v33  ;;  %v977_v4 = vpop.f32.mrf.mxu1 }
 0x153   :  { %v560_v27 = vadd.f32 %v559_v60, %v1754_v55 }
 0x154   :  { %v974_v45 = vadd.f32 %v973_v50, %v857_v59  ;;  %1143 = vrot.lane.b32.xlu2 %v1117_v28, %s1305_s23  ;;  %v1118_v43 = vmul.f32 %v1905_v10, %v1117_v28 }
 0x156   :  { %v1119_v16 = vmul.f32 %v1892_v35, %v974_v45 }
 0x157   :  { %v713_v49 = vpop.f32.mrf.mxu3  ;;  %v864_v40 = vpop.f32.mrf.mxu0 }
 0x158   :  { %v1120_v25 = vadd.f32 %v1119_v16, %v1898_v56  ;;  %v714_v41 = vadd.f32 %v713_v49, %v560_v27 }
 0x15a   :  { %v564_v51 = vpop.f32.mrf.mxu2  ;;  %v861_v61 = vadd.f32 %v860_v24, %v714_v41  ;;  %v1121_v36 = vadd.f32 %v1120_v25, %v1118_v43  ;;  %v981_v26 = vpop.f32.mrf.mxu1 }
 0x15b   :  { %v565_v18 = vadd.f32 %v564_v51, %v1765_v13 }
 0x15c   :  { %v978_v62 = vadd.f32 %v977_v4, %v861_v61  ;;  %1147 = vrot.lane.b32.xlu1 %v1121_v36, %s1306_s24  ;;  %v1122_v9 = vmul.f32 %v1905_v10, %v1121_v36 }
 0x15e   :  { %v1123_v55 = vmul.f32 %v1892_v35, %v978_v62 }
 0x15f   :  { %v719_v19 = vpop.f32.mrf.mxu3  ;;  %v868_v53 = vpop.f32.mrf.mxu0 }
 0x160   :  { %v1124_v46 = vadd.f32 %v1123_v55, %v1898_v56  ;;  %v720_v7 = vadd.f32 %v719_v19, %v565_v18 }
 0x162   :  { %v569_v29 = vpop.f32.mrf.mxu2  ;;  %v865_v17 = vadd.f32 %v864_v40, %v720_v7  ;;  %v1125_v1 = vadd.f32 %v1124_v46, %v1122_v9  ;;  %v985_v58 = vpop.f32.mrf.mxu1 }
 0x163   :  { %v570_v32 = vadd.f32 %v569_v29, %v1776_v48 }
 0x164   :  { %v982_v21 = vadd.f32 %v981_v26, %v865_v17  ;;  %1151 = vrot.lane.b32.xlu0 %v1125_v1, %s1307_s25  ;;  %v1126_v11 = vmul.f32 %v1905_v10, %v1125_v1 }
 0x166   :  { %v1127_v13 = vmul.f32 %v1892_v35, %v982_v21 }
 0x167   :  { %v725_v2 = vpop.f32.mrf.mxu3  ;;  %v872_v42 = vpop.f32.mrf.mxu0 }
 0x168   :  { %v1128_v12 = vadd.f32 %v1127_v13, %v1898_v56  ;;  %v726_v47 = vadd.f32 %v725_v2, %v570_v32 }
 0x16a   :  { %v574_v23 = vpop.f32.mrf.mxu2  ;;  %v869_v54 = vadd.f32 %v868_v53, %v726_v47  ;;  %v1129_v50 = vadd.f32 %v1128_v12, %v1126_v11  ;;  %v989_v8 = vpop.f32.mrf.mxu1 }
 0x16b   :  { %v575_v44 = vadd.f32 %v574_v23, %v1787_v30 }
 0x16c   :  { %v986_v63 = vadd.f32 %v985_v58, %v869_v54  ;;  %1155 = vrot.lane.b32.xlu2 %v1129_v50, %s1308_s26  ;;  %v1130_v37 = vmul.f32 %v1905_v10, %v1129_v50 }
 0x16e   :  { %v1131_v48 = vmul.f32 %v1892_v35, %v986_v63 }
 0x16f   :  { %v731_v31 = vpop.f32.mrf.mxu3  ;;  %v876_v22 = vpop.f32.mrf.mxu0 }
 0x170   :  { %v1132_v24 = vadd.f32 %v1131_v48, %v1898_v56  ;;  %v732_v3 = vadd.f32 %v731_v31, %v575_v44 }
 0x172   :  { %v579_v33 = vpop.f32.mrf.mxu2  ;;  %v873_v60 = vadd.f32 %v872_v42, %v732_v3  ;;  %v1133_v59 = vadd.f32 %v1132_v24, %v1130_v37  ;;  %v993_v28 = vpop.f32.mrf.mxu1 }
 0x173   :  { %v580_v45 = vadd.f32 %v579_v33, %v1798_v14 }
 0x174   :  { %v990_v4 = vadd.f32 %v989_v8, %v873_v60  ;;  %1159 = vrot.lane.b32.xlu1 %v1133_v59, %s1309_s27  ;;  %v1134_v40 = vmul.f32 %v1905_v10, %v1133_v59 }
 0x176   :  { %v1135_v30 = vmul.f32 %v1892_v35, %v990_v4 }
 0x177   :  { %v737_v27 = vpop.f32.mrf.mxu3  ;;  %v880_v16 = vpop.f32.mrf.mxu0 }
 0x178   :  { %v1136_v49 = vadd.f32 %v1135_v30, %v1898_v56  ;;  %v738_v25 = vadd.f32 %v737_v27, %v580_v45 }
 0x17a   :  { %v2032_v41 = vadd.f32 %v1136_v49, %v1134_v40  ;;  %v584_v43 = vpop.f32.mrf.mxu2  ;;  %v877_v51 = vadd.f32 %v876_v22, %v738_v25  ;;  %v997_v61 = vpop.f32.mrf.mxu1 }
 0x17b   :  { %v585_v26 = vadd.f32 %v584_v43, %v1809_v6 }
 0x17c   :  { %v994_v36 = vadd.f32 %v993_v28, %v877_v51  ;;  %v1174_v55 = vmul.f32 %v1905_v10, %v2032_v41 }
 0x17e   :  { %v1175_v62 = vmul.f32 %v1892_v35, %v994_v36 }
 0x17f   :  { %v743_v14 = vpop.f32.mrf.mxu3  ;;  %v884_v18 = vpop.f32.mrf.mxu0 }
 0x180   :  { %v1176_v19 = vadd.f32 %v1175_v62, %v1898_v56  ;;  %v744_v53 = vadd.f32 %v743_v14, %v585_v26 }
 0x182   :  { %v2039_v46 = vadd.f32 %v1176_v19, %v1174_v55  ;;  %v589_v7 = vpop.f32.mrf.mxu2  ;;  %v881_v9 = vadd.f32 %v880_v16, %v744_v53  ;;  %v1001_v29 = vpop.f32.mrf.mxu1 }
 0x183   :  { %v590_v1 = vadd.f32 %v589_v7, %v1820_v39 }
 0x184   :  { %v998_v17 = vadd.f32 %v997_v61, %v881_v9  ;;  %v1178_v2 = vmul.f32 %v1905_v10, %v2039_v46 }
 0x186   :  { %v1179_v6 = vmul.f32 %v1892_v35, %v998_v17 }
 0x187   :  { %v749_v58 = vpop.f32.mrf.mxu3  ;;  %v888_v21 = vpop.f32.mrf.mxu0 }
 0x188   :  { %v1180_v32 = vadd.f32 %v1179_v6, %v1898_v56  ;;  %v750_v13 = vadd.f32 %v749_v58, %v590_v1 }
 0x18a   :  { %v594_v42 = vpop.f32.mrf.mxu2  ;;  %v885_v12 = vadd.f32 %v884_v18, %v750_v13  ;;  %v1181_v47 = vadd.f32 %v1180_v32, %v1178_v2  ;;  %v1005_v11 = vpop.f32.mrf.mxu1 }
 0x18b   :  { %v595_v54 = vadd.f32 %v594_v42, %v1831_v57 }
 0x18c   :  { %v1002_v23 = vadd.f32 %v1001_v29, %v885_v12  ;;  %1207 = vrot.lane.b32.xlu1 %v1181_v47, %s1304_s2  ;;  %v1182_v44 = vmul.f32 %v1905_v10, %v1181_v47 }
 0x18e   :  { %v1183_v39 = vmul.f32 %v1892_v35, %v1002_v23 }
 0x18f   :  { %v755_v50 = vpop.f32.mrf.mxu3  ;;  %v892_v48 = vpop.f32.mrf.mxu0 }
 0x190   :  { %v1184_v8 = vadd.f32 %v1183_v39, %v1898_v56  ;;  %v756_v63 = vadd.f32 %v755_v50, %v595_v54 }
 0x192   :  { %v599_v31 = vpop.f32.mrf.mxu2  ;;  %v889_v22 = vadd.f32 %v888_v21, %v756_v63  ;;  %v1185_v24 = vadd.f32 %v1184_v8, %v1182_v44  ;;  %v1009_v3 = vpop.f32.mrf.mxu1 }
 0x193   :  { %v600_v33 = vadd.f32 %v599_v31, %v1842_v38  ;;  %v1082_v63 = vpop.permute.xlu2 %1081  ;;  %v1074_v44 = vpop.permute.xlu1 %1073 }
 0x194   :  { %v1006_v37 = vadd.f32 %v1005_v11, %v889_v22  ;;  %1211 = vrot.lane.b32.xlu0 %v1185_v24, %s1305_s23  ;;  %v1186_v4 = vmul.f32 %v1905_v10, %v1185_v24 }
 0x196   :  { %v1187_v57 = vmul.f32 %v1892_v35, %v1006_v37 }
 0x197   :  { %v761_v60 = vpop.f32.mrf.mxu3  ;;  %v896_v16 = vpop.f32.mrf.mxu0 }
 0x198   :  { %v1188_v59 = vadd.f32 %v1187_v57, %v1898_v56  ;;  %v762_v28 = vadd.f32 %v761_v60, %v600_v33 }
 0x19a   :  { %v604_v45 = vpop.f32.mrf.mxu2  ;;  %v893_v30 = vadd.f32 %v892_v48, %v762_v28  ;;  %v1189_v27 = vadd.f32 %v1188_v59, %v1186_v4  ;;  %v1013_v40 = vpop.f32.mrf.mxu1 }
 0x19b   :  { %v605_v25 = vadd.f32 %v604_v45, %v1857_v20  ;;  %v1066_v48 = vpop.permute.xlu0 %1065  ;;  %v1086_v31 = vpop.permute.xlu2 %1085 }
 0x19c   :  { %v1010_v49 = vadd.f32 %v1009_v3, %v893_v30  ;;  %1215 = vrot.lane.b32.xlu2 %v1189_v27, %s1306_s24  ;;  %v1190_v36 = vmul.f32 %v1905_v10, %v1189_v27  ;;  %v1078_v22 = vpop.permute.xlu1 %1077 }
 0x19e   :  { %v1191_v38 = vmul.f32 %v1892_v35, %v1010_v49 }
 0x19f   :  { %v767_v43 = vpop.f32.mrf.mxu3  ;;  %v900_v55 = vpop.f32.mrf.mxu0 }
 0x1a0   :  { %v1192_v51 = vadd.f32 %v1191_v38, %v1898_v56  ;;  %v768_v61 = vadd.f32 %v767_v43, %v605_v25 }
 0x1a2   :  { %v609_v26 = vpop.f32.mrf.mxu2  ;;  %v897_v62 = vadd.f32 %v896_v16, %v768_v61  ;;  %v1193_v14 = vadd.f32 %v1192_v51, %v1190_v36  ;;  %v1017_v7 = vpop.f32.mrf.mxu1 }
 0x1a3   :  { %v610_v19 = vadd.f32 %v609_v26, %v1868_v0  ;;  %v1070_v24 = vpop.permute.xlu0 %1069 }
 0x1a4   :  { %v1014_v18 = vadd.f32 %v1013_v40, %v897_v62  ;;  %1219 = vrot.lane.b32.xlu1 %v1193_v14, %s1307_s25  ;;  %v1194_v17 = vmul.f32 %v1905_v10, %v1193_v14 }
 0x1a6   :  { %v1195_v53 = vmul.f32 %v1892_v35, %v1014_v18 }
 0x1a7   :  { %v773_v20 = vpop.f32.mrf.mxu3  ;;  %v904_v2 = vpop.f32.mrf.mxu0 }
 0x1a8   :  { %v1196_v9 = vadd.f32 %v1195_v53, %v1898_v56  ;;  %v774_v29 = vadd.f32 %v773_v20, %v610_v19 }
 0x1aa   :  { %v901_v1 = vadd.f32 %v900_v55, %v774_v29  ;;  %v1197_v6 = vadd.f32 %v1196_v9, %v1194_v17  ;;  %v614_v58 = vpop.f32.mrf.mxu2  ;;  %v1021_v11 = vpop.f32.mrf.mxu1 }
 0x1ab   :  { %v615_v0 = vadd.f32 %v614_v58, %v1877_v34 }
 0x1ac   :  { %v1018_v21 = vadd.f32 %v1017_v7, %v901_v1  ;;  %1163 = vrot.lane.b32.xlu1 %v2032_v41, %s1310_s28  ;;  %1223 = vrot.lane.b32.xlu0 %v1197_v6, %s1308_s26  ;;  %v1198_v47 = vmul.f32 %v1905_v10, %v1197_v6 }
 0x1ae   :  { %v1199_v32 = vmul.f32 %v1892_v35, %v1018_v21  ;;  %v1144_v3 = vpop.permute.xlu2 %1143 }
 0x1af   :  { %v779_v13 = vpop.f32.mrf.mxu3 }
 0x1b0   :  { %v1200_v42 = vadd.f32 %v1199_v32, %v1898_v56  ;;  %v780_v12 = vadd.f32 %v779_v13, %v615_v0 }
 0x1b2   :  { %v905_v23 = vadd.f32 %v904_v2, %v780_v12  ;;  %v1201_v54 = vadd.f32 %v1200_v42, %v1198_v47 }
 0x1b4   :  { %v1022_v39 = vadd.f32 %v1021_v11, %v905_v23  ;;  %1089 = vrot.lane.b32.xlu0 %v1985_v5, %s1310_s28  ;;  %1227 = vrot.lane.b32.xlu2 %v1201_v54, %s1309_s27  ;;  %v1202_v50 = vmul.f32 %v1905_v10, %v1201_v54 }
 0x1b6   :  { %v1203_v41 = vmul.f32 %v1892_v35, %v1022_v39 }
 0x1b8   :  { %v1204_v34 = vadd.f32 %v1203_v41, %v1898_v56 }
 0x1ba   :  { %v1205_v8 = vadd.f32 %v1204_v34, %v1202_v50 }
 0x1bc   :  { %1231 = vrot.lane.b32.xlu2 %v1205_v8, %s1310_s28  ;;  %1242 = vst.msk [vmem:[#allocation2] sm:$0xff] %vm23_vm1, %v1205_v8 }
 0x1be   :  { %v1140_v37 = vpop.permute.xlu0 %1139 }
 0x1bf   :  { %v1166_v10 = vsel %vm23_vm1, %v1995_v52, %v1140_v37  ;;  %v1093_v52 = vsel %vm23_vm1, %v1917_v15, %v1066_v48 }
 0x1c0   :  { %v1167_v45 = vsel %vm53_vm0, %v1166_v10, %v1144_v3  ;;  %v1094_v38 = vsel %vm53_vm0, %v1093_v52, %v1070_v24 }
 0x1c1   :  { %v1096_v36 = vsel %vm1095_vm2, %v1094_v38, %v1074_v44 }
 0x1c2   :  { %v1098_v15 = vsel %vm1097_vm3, %v1096_v36, %v1078_v22 }
 0x1c3   :  { %v1100_v19 = vsel %vm1099_vm4, %v1098_v15, %v1082_v63 }
 0x1c4   :  { %v1102_v53 = vsel %vm1101_vm6, %v1100_v19, %v1086_v31 }
 0x1c6   :  { %v1156_v33 = vpop.permute.xlu2 %1155 }
 0x1ce   :  { %v1148_v5 = vpop.permute.xlu1 %1147 }
 0x1cf   :  { %v1168_v30 = vsel %vm1095_vm2, %v1167_v45, %v1148_v5 }
 0x1d6   :  { %v1152_v35 = vpop.permute.xlu0 %1151 }
 0x1d7   :  { %v1169_v16 = vsel %vm1097_vm3, %v1168_v30, %v1152_v35 }
 0x1d8   :  { %v1170_v40 = vsel %vm1099_vm4, %v1169_v16, %v1156_v33 }
 0x1e6   :  { %v1160_v57 = vpop.permute.xlu1 %1159 }
 0x1e7   :  { %v1171_v43 = vsel %vm1101_vm6, %v1170_v40, %v1160_v57 }
 0x1f6   :  { %v1216_v60 = vpop.permute.xlu2 %1215 }
 0x1fe   :  { %v1208_v56 = vpop.permute.xlu1 %1207 }
 0x1ff   :  { %v1234_v27 = vsel %vm23_vm1, %v2039_v46, %v1208_v56 }
 0x206   :  { %v1212_v59 = vpop.permute.xlu0 %1211 }
 0x207   :  { %v1235_v49 = vsel %vm53_vm0, %v1234_v27, %v1212_v59 }
 0x208   :  { %v1236_v25 = vsel %vm1095_vm2, %v1235_v49, %v1216_v60 }
 0x20e   :  { %v1228_v28 = vpop.permute.xlu2 %1227 }
 0x216   :  { %v1220_v4 = vpop.permute.xlu1 %1219  ;;  %v1232_v14 = vpop.permute.xlu2 %1231 }
 0x217   :  { %v1237_v46 = vsel %vm1097_vm3, %v1236_v25, %v1220_v4 }
 0x21e   :  { %v1164_v51 = vpop.permute.xlu1 %1163  ;;  %v1224_v61 = vpop.permute.xlu0 %1223 }
 0x21f   :  { %v1172_v26 = vsel %vm1103_vm5, %v1171_v43, %v1164_v51  ;;  %v1238_v62 = vsel %vm1099_vm4, %v1237_v46, %v1224_v61 }
 0x220   :  { %1173 = vst [vmem:[#allocation3 + $0x8] sm:$0xff] %v1172_v26  ;;  %v1239_v18 = vsel %vm1101_vm6, %v1238_v62, %v1228_v28 }
 0x221   :  { %v1240_v55 = vsel %vm1103_vm5, %v1239_v18, %v1232_v14 }
 0x222   :  { %1241 = vst [vmem:[#allocation3 + $0x10] sm:$0xff] %v1240_v55 }
 0x226   :  { %v1090_v20 = vpop.permute.xlu0 %1089 }
 0x227   :  { %v1104_v7 = vsel %vm1103_vm5, %v1102_v53, %v1090_v20 }
 0x228   :  { %1105 = vst [vmem:[#allocation3] sm:$0xff] %v1104_v7 }
 0x229   :  { %1253 = dma.vmem_to_hbm [thread:$0]  %s1249_s1, 384, %s1251_s6, [#allocation4]  }
 0x22a   :  { %1302 = dma.done.wait [#allocation4], 384  }
 0x22b   :  { %1303 = vsyncadd [#allocation4], 4294966912 }
 0x22c   :  { %1258 = vsyncpa [#allocation4], 1 }

</bundles_post_ra>
